<compile_context>
chip_gen: v7x
topology: tpu7x:2x2x1
jax: 0.10.0
libtpu: 0.0.40
codegen_flags: <defaults>
</compile_context>

<pallas_src>
import functools

import jax
import jax.numpy as jnp
from jax.experimental import pallas as pl
from jax.experimental.pallas import tpu as pltpu


def _bottleneck_kernel(x_ref, w1_ref, b1_ref, wd_ref, b2_ref, w3_ref, b3_ref,
                       o_ref, *, Nb, H, W, Cin, Cmid, Cout, K, stride, pad,
                       Ho, Wo, use_residual):
    L = W * Cmid                      # packed lane width of the expanded act.
    R = Nb * H                        # stacked rows, batch-major

    x = x_ref[...].reshape(R, W * Cin)          # f32, lane-dense (free merge)
    x_bf = x.astype(jnp.bfloat16)

    # ---- stage 1: single 1x1 expand conv (BN folded), bias + ReLU6 ----------
    z = jnp.dot(x_bf, w1_ref[...], preferred_element_type=jnp.float32)
    h1 = jnp.clip(z + b1_ref[...], 0.0, 6.0)                 # (R, L)

    # ---- depthwise column (W) taps: XLU lane rolls of the single result -----
    lane = jax.lax.broadcasted_iota(jnp.int32, (R, L), 1)
    taps = []
    for kw in range(K):
        dw = kw - pad
        if dw == 0:
            taps.append(h1)
            continue
        # v[:, l] = h1[:, l + dw*Cmid]; wrapped lanes are zeroed by the mask
        # (== the 'same' zero padding of the depthwise conv).
        v = pltpu.roll(h1, shift=(-dw * Cmid) % L, axis=1)
        if dw > 0:
            v = jnp.where(lane < (W - dw) * Cmid, v, 0.0)    # zero right edge
        else:
            v = jnp.where(lane >= (-dw) * Cmid, v, 0.0)      # zero left edge
        taps.append(v)

    # ---- stage 2: depthwise KxK conv (BN folded), bias + ReLU6 --------------
    # Row (H) taps via sublane rolls; the mask also stops rows leaking across
    # batch boundaries when Nb > 1 (row index is taken modulo H).
    row_in_b = jax.lax.broadcasted_iota(jnp.int32, (R, L), 0) % H
    acc = jnp.zeros((R, L), jnp.float32)
    for kh in range(K):
        dh = kh - pad
        t = taps[0] * wd_ref[pl.ds(kh * K, 1), :]            # (1, L) bcast load
        for kw in range(1, K):
            t = t + taps[kw] * wd_ref[pl.ds(kh * K + kw, 1), :]
        if dh != 0:
            t = pltpu.roll(t, shift=(-dh) % R, axis=0)       # t[i] <- t[i+dh]
            if dh > 0:
                t = jnp.where(row_in_b < H - dh, t, 0.0)
            else:
                t = jnp.where(row_in_b >= -dh, t, 0.0)
        acc = acc + t

    if stride > 1:
        # One 0/1 selection matmul per kernel (not per tap): output row
        # b*Ho + i reads accumulated row b*H + i*stride.
        Ro = Nb * Ho
        ri = jax.lax.broadcasted_iota(jnp.int32, (Ro, R), 0)
        cj = jax.lax.broadcasted_iota(jnp.int32, (Ro, R), 1)
        sel = (cj == (ri // Ho) * H + (ri % Ho) * stride).astype(jnp.float32)
        acc = jnp.dot(sel, acc, preferred_element_type=jnp.float32)
        # TODO(synk): for stride>1, also fold the W decimation into the column
        # taps so stage 2 runs at Wo columns (stride x less work).

    h2 = jnp.clip(acc + b2_ref[...], 0.0, 6.0)               # (Nb*Ho, L)

    # ---- stage 3: 1x1 project conv (BN + W-stride decimation folded) --------
    h3 = jnp.dot(h2.astype(jnp.bfloat16), w3_ref[...],
                 preferred_element_type=jnp.float32)         # (Nb*Ho, Wo*Cout)
    h3 = h3 + b3_ref[...]
    if use_residual:
        h3 = h3 + x
    o_ref[...] = h3.reshape(Nb, Ho, Wo * Cout).astype(o_ref.dtype)


def make_bottleneck(*, H, W, Cin, Cmid, Cout, kernel_size, stride):
    K = kernel_size
    pad = (K - 1) // 2
    Ho = (H + 2 * pad - K) // stride + 1
    Wo = (W + 2 * pad - K) // stride + 1
    use_residual = (stride == 1 and Cin == Cout)

    def _rep_spec(shape):
        # Constant index_map -> block is resident across grid steps.  At these
        # sizes default double-buffering only costs ~0.3 MiB; at real layer
        # sizes single-buffer these blocks (pipeline_mode=pl.Buffered(1)).
        nd = len(shape)
        return pl.BlockSpec(shape, lambda n, _nd=nd: (0,) * _nd)

    def pack_params(w1, sc1, bi1, wd, sc2, bi2, w3, sc3, bi3):
        """Fold BN scales into conv weights and pack into lane-dense layouts."""
        w1f = w1 * sc1[None, :]                        # (Cin, Cmid)
        wdf = wd * sc2[None, None, :]                  # (K, K, Cmid)
        w3f = w3 * sc3[None, :]                        # (Cmid, Cout)

        # Single block-diagonal expand weight (column taps are rolls in-kernel).
        w1_blk = jnp.kron(jnp.eye(W, dtype=jnp.float32),
                          w1f).astype(jnp.bfloat16)            # (W*Cin, W*Cmid)
        # Project weight with the W-direction stride decimation folded in.
        col_sel = (jnp.arange(W)[:, None] ==
                   (jnp.arange(Wo) * stride)[None, :]).astype(jnp.float32)
        w3_blk = jnp.kron(col_sel, w3f).astype(jnp.bfloat16)   # (W*Cmid, Wo*Cout)

        wd_pk = jnp.tile(wdf.reshape(K * K, Cmid), (1, W))     # (K*K, W*Cmid)
        b1_pk = jnp.tile(bi1, W)[None, :]                      # (1, W*Cmid)
        b2_pk = jnp.tile(bi2, W)[None, :]                      # (1, W*Cmid)
        b3_pk = jnp.tile(bi3, Wo)[None, :]                     # (1, Wo*Cout)
        return w1_blk, b1_pk, wd_pk, b2_pk, w3_blk, b3_pk

    def _pick_nb(N, batch_block):
        if batch_block is not None:
            assert N % batch_block == 0, "batch_block must divide N"
            return batch_block
        # Largest batch block that still leaves >= 2 grid steps so both v7x
        # TensorCores get work; N == 1 falls back to a single step.
        for nb in range(max(N // 2, 1), 0, -1):
            if N % nb == 0:
                return nb
        return 1

    def fwd_packed(x_pk, packed, *, batch_block=None):
        """x_pk: (N, H, W*Cin) packed channels-last; returns (N, Ho, Wo*Cout)."""
        w1_blk, b1_pk, wd_pk, b2_pk, w3_blk, b3_pk = packed
        N = x_pk.shape[0]
        Nb = _pick_nb(N, batch_block)
        kern = functools.partial(
            _bottleneck_kernel, Nb=Nb, H=H, W=W, Cin=Cin, Cmid=Cmid, Cout=Cout,
            K=K, stride=stride, pad=pad, Ho=Ho, Wo=Wo,
            use_residual=use_residual)
        return pl.pallas_call(
            kern,
            out_shape=jax.ShapeDtypeStruct((N, Ho, Wo * Cout), x_pk.dtype),
            grid=(N // Nb,),
            in_specs=[
                pl.BlockSpec((Nb, H, W * Cin), lambda n: (n, 0, 0)),
                _rep_spec((W * Cin, W * Cmid)),
                _rep_spec((1, W * Cmid)),
                _rep_spec((K * K, W * Cmid)),
                _rep_spec((1, W * Cmid)),
                _rep_spec((W * Cmid, Wo * Cout)),
                _rep_spec((1, Wo * Cout)),
            ],
            out_specs=pl.BlockSpec((Nb, Ho, Wo * Cout), lambda n: (n, 0, 0)),
            compiler_params=pltpu.CompilerParams(
                dimension_semantics=("parallel",)),
        )(x_pk, w1_blk, b1_pk, wd_pk, b2_pk, w3_blk, b3_pk)

    def fwd(x_nchw, packed, *, batch_block=None):
        # NCHW <-> packed conversion only at the network boundary; chain
        # consecutive bottlenecks through fwd_packed to avoid paying the
        # HBM-bound transposes once per layer.
        N = x_nchw.shape[0]
        x_pk = jnp.transpose(x_nchw, (0, 2, 3, 1)).reshape(N, H, W * Cin)
        out_pk = fwd_packed(x_pk, packed, batch_block=batch_block)
        return out_pk.reshape(N, Ho, Wo, Cout).transpose(0, 3, 1, 2)

    return fwd, fwd_packed, pack_params, use_residual, (pad, Ho, Wo)


def _reference(x_nchw, raw, *, K, stride, pad, Ho, Wo, use_residual):
    """Pure-JAX f32 reference with eval-mode (folded) BatchNorm."""
    w1, sc1, bi1, wd, sc2, bi2, w3, sc3, bi3 = raw
    x = jnp.transpose(x_nchw, (0, 2, 3, 1))                  # NHWC
    h = jnp.einsum('nhwc,cd->nhwd', x, w1)
    h = jnp.clip(h * sc1 + bi1, 0.0, 6.0)
    hp = jnp.pad(h, ((0, 0), (pad, pad), (pad, pad), (0, 0)))
    acc = jnp.zeros(x.shape[:1] + (Ho, Wo, h.shape[-1]), jnp.float32)
    for kh in range(K):
        for kw in range(K):
            win = hp[:, kh:kh + stride * (Ho - 1) + 1:stride,
                        kw:kw + stride * (Wo - 1) + 1:stride, :]
            acc = acc + win * wd[kh, kw]
    h = jnp.clip(acc * sc2 + bi2, 0.0, 6.0)
    h = jnp.einsum('nhwc,cd->nhwd', h, w3)
    h = h * sc3 + bi3
    if use_residual:
        h = h + x
    return jnp.transpose(h, (0, 3, 1, 2))                    # NCHW


if __name__ == "__main__":
    # Bottleneck(in_channel=8, out_channel=8, middle_channel=32,
    #            kernel_size=3, stride=1) -> residual path active.
    N, Cin, H, W = 2, 8, 16, 16
    Cmid, Cout, K, stride = 32, 8, 3, 1

    key = jax.random.PRNGKey(0)
    ks = jax.random.split(key, 8)

    w1 = jax.random.normal(ks[0], (Cin, Cmid), jnp.float32) * 0.1    # 1x1 expand
    wd = jax.random.normal(ks[1], (K, K, Cmid), jnp.float32) * 0.1   # depthwise
    w3 = jax.random.normal(ks[2], (Cmid, Cout), jnp.float32) * 0.1   # 1x1 project

    def bn_params(k, C, eps=1e-5):
        k1, k2, k3, k4 = jax.random.split(k, 4)
        gamma = jax.random.uniform(k1, (C,), jnp.float32, 0.5, 1.5)
        beta = jax.random.normal(k2, (C,), jnp.float32) * 0.1
        mean = jax.random.normal(k3, (C,), jnp.float32) * 0.1
        var = jax.random.uniform(k4, (C,), jnp.float32, 0.5, 1.5)
        scale = gamma / jnp.sqrt(var + eps)
        bias = beta - mean * scale
        return scale, bias

    sc1, bi1 = bn_params(ks[3], Cmid)
    sc2, bi2 = bn_params(ks[4], Cmid)
    sc3, bi3 = bn_params(ks[5], Cout)
    raw = (w1, sc1, bi1, wd, sc2, bi2, w3, sc3, bi3)

    x_nchw = jax.random.normal(ks[6], (N, Cin, H, W), jnp.float32)

    fwd, fwd_packed, pack_params, use_residual, (pad, Ho, Wo) = make_bottleneck(
        H=H, W=W, Cin=Cin, Cmid=Cmid, Cout=Cout, kernel_size=K, stride=stride)
    packed = pack_params(*raw)

    out = jax.block_until_ready(fwd(x_nchw, packed))
    ref = _reference(x_nchw, raw, K=K, stride=stride, pad=pad, Ho=Ho, Wo=Wo,
                     use_residual=use_residual)

    assert out.shape == (N, Cout, Ho, Wo)
    # bf16 MXU operands (f32 accumulation) -> tolerance loosened vs f32 ref.
    max_err = float(jnp.max(jnp.abs(out - ref)))
    assert jnp.allclose(out, ref, atol=5e-2, rtol=2e-2), max_err
    print("KERNEL_OK")
</pallas_src>

<mosaic_0001>
module attributes {stable_mosaic.version = 11 : i64} {
  func.func @_bottleneck_kernel(%arg0: i32, %arg1: memref<1x16x128xf32, #tpu.memory_space<vmem>>, %arg2: memref<128x512xbf16, #tpu.memory_space<vmem>>, %arg3: memref<1x512xf32, #tpu.memory_space<vmem>>, %arg4: memref<9x512xf32, #tpu.memory_space<vmem>>, %arg5: memref<1x512xf32, #tpu.memory_space<vmem>>, %arg6: memref<512x128xbf16, #tpu.memory_space<vmem>>, %arg7: memref<1x128xf32, #tpu.memory_space<vmem>>, %arg8: memref<1x16x128xf32, #tpu.memory_space<vmem>>) attributes {dimension_semantics = [#tpu.dimension_semantics<parallel>], iteration_bounds = array<i64: 2>, scalar_prefetch = 0 : i64, scratch_operands = 0 : i64, tpu.core_type = #tpu.core_type<tc>, window_params = [{transform_indices = @transform_0, window_bounds = array<i64: 1, 16, 128>}, {pipeline_mode = #tpu.pipeline_mode<synchronous>, transform_indices = @transform_1, window_bounds = array<i64: 128, 512>}, {pipeline_mode = #tpu.pipeline_mode<synchronous>, transform_indices = @transform_2, window_bounds = array<i64: 1, 512>}, {pipeline_mode = #tpu.pipeline_mode<synchronous>, transform_indices = @transform_3, window_bounds = array<i64: 9, 512>}, {pipeline_mode = #tpu.pipeline_mode<synchronous>, transform_indices = @transform_4, window_bounds = array<i64: 1, 512>}, {pipeline_mode = #tpu.pipeline_mode<synchronous>, transform_indices = @transform_5, window_bounds = array<i64: 512, 128>}, {pipeline_mode = #tpu.pipeline_mode<synchronous>, transform_indices = @transform_6, window_bounds = array<i64: 1, 128>}, {transform_indices = @transform_7, window_bounds = array<i64: 1, 16, 128>}]} {
    %c0 = arith.constant 0 : index
    %c0_0 = arith.constant 0 : index
    %c0_1 = arith.constant 0 : index
    %0 = vector.load %arg1[%c0, %c0_0, %c0_1] : memref<1x16x128xf32, #tpu.memory_space<vmem>>, vector<1x16x128xf32>
    %1 = vector.shape_cast %0 : vector<1x16x128xf32> to vector<16x128xf32>
    %2 = arith.truncf %1 : vector<16x128xf32> to vector<16x128xbf16>
    %c0_2 = arith.constant 0 : index
    %c0_3 = arith.constant 0 : index
    %3 = vector.load %arg2[%c0_2, %c0_3] : memref<128x512xbf16, #tpu.memory_space<vmem>>, vector<128x512xbf16>
    %cst = arith.constant dense<0.000000e+00> : vector<16x512xf32>
    %4 = tpu.matmul %2, %3, %cst {dimension_numbers = #tpu.dot_dimension_numbers<[1], [0], [0], [1], [0, 0, 1, 1], [], []>} : vector<16x128xbf16>, vector<128x512xbf16>, vector<16x512xf32> -> vector<16x512xf32>
    %c0_4 = arith.constant 0 : index
    %c0_5 = arith.constant 0 : index
    %5 = vector.load %arg3[%c0_4, %c0_5] : memref<1x512xf32, #tpu.memory_space<vmem>>, vector<1x512xf32>
    %6 = vector.broadcast %5 : vector<1x512xf32> to vector<16x512xf32>
    %7 = arith.addf %4, %6 : vector<16x512xf32>
    %cst_6 = arith.constant 0.000000e+00 : f32
    %cst_7 = arith.constant 6.000000e+00 : f32
    %8 = vector.broadcast %cst_6 : f32 to vector<16x512xf32>
    %9 = arith.maximumf %8, %7 : vector<16x512xf32>
    %10 = vector.broadcast %cst_7 : f32 to vector<16x512xf32>
    %11 = arith.minimumf %10, %9 : vector<16x512xf32>
    %12 = tpu.iota {dimensions = array<i32: 1>} : vector<16x512xi32>
    %c32_i32 = arith.constant 32 : i32
    %13 = tpu.dynamic_rotate %11 by %c32_i32 dim 1 : vector<16x512xf32>, i32 -> vector<16x512xf32>
    %c32_i32_8 = arith.constant 32 : i32
    %14 = vector.broadcast %c32_i32_8 : i32 to vector<16x512xi32>
    %15 = arith.cmpi sge, %12, %14 : vector<16x512xi32>
    %cst_9 = arith.constant 0.000000e+00 : f32
    %16 = vector.broadcast %cst_9 : f32 to vector<16x512xf32>
    %17 = arith.select %15, %13, %16 : vector<16x512xi1>, vector<16x512xf32>
    %c480_i32 = arith.constant 480 : i32
    %18 = tpu.dynamic_rotate %11 by %c480_i32 dim 1 : vector<16x512xf32>, i32 -> vector<16x512xf32>
    %c480_i32_10 = arith.constant 480 : i32
    %19 = vector.broadcast %c480_i32_10 : i32 to vector<16x512xi32>
    %20 = arith.cmpi slt, %12, %19 : vector<16x512xi32>
    %cst_11 = arith.constant 0.000000e+00 : f32
    %21 = vector.broadcast %cst_11 : f32 to vector<16x512xf32>
    %22 = arith.select %20, %18, %21 : vector<16x512xi1>, vector<16x512xf32>
    %23 = tpu.iota {dimensions = array<i32: 0>} : vector<16x512xi32>
    %c16_i32 = arith.constant 16 : i32
    %c0_i32 = arith.constant 0 : i32
    %24 = arith.cmpi eq, %c16_i32, %c0_i32 : i32
    %c1_i32 = arith.constant 1 : i32
    %25 = arith.select %24, %c1_i32, %c16_i32 : i32
    %26 = vector.broadcast %25 : i32 to vector<16x512xi32>
    %27 = arith.remsi %23, %26 : vector<16x512xi32>
    %c0_i32_12 = arith.constant 0 : i32
    %28 = vector.broadcast %c0_i32_12 : i32 to vector<16x512xi32>
    %29 = arith.cmpi ne, %27, %28 : vector<16x512xi32>
    %c0_i32_13 = arith.constant 0 : i32
    %30 = vector.broadcast %c0_i32_13 : i32 to vector<16x512xi32>
    %31 = arith.cmpi slt, %27, %30 : vector<16x512xi32>
    %c0_i32_14 = arith.constant 0 : i32
    %32 = arith.cmpi slt, %25, %c0_i32_14 : i32
    %33 = vector.broadcast %32 : i1 to vector<16x512xi1>
    %34 = vector.broadcast %33 : vector<16x512xi1> to vector<16x512xi1>
    %35 = arith.xori %31, %34 : vector<16x512xi1>
    %36 = arith.andi %35, %29 : vector<16x512xi1>
    %37 = vector.broadcast %25 : i32 to vector<16x512xi32>
    %38 = arith.addi %27, %37 : vector<16x512xi32>
    %39 = arith.select %36, %38, %27 : vector<16x512xi1>, vector<16x512xi32>
    %cst_15 = arith.constant 0.000000e+00 : f32
    %40 = vector.broadcast %cst_15 : f32 to vector<16x512xf32>
    %c0_16 = arith.constant 0 : index
    %c0_17 = arith.constant 0 : index
    %41 = vector.load %arg4[%c0_16, %c0_17] : memref<9x512xf32, #tpu.memory_space<vmem>>, vector<1x512xf32>
    %42 = vector.broadcast %41 : vector<1x512xf32> to vector<16x512xf32>
    %43 = arith.mulf %17, %42 : vector<16x512xf32>
    %c1 = arith.constant 1 : index
    %c0_18 = arith.constant 0 : index
    %44 = vector.load %arg4[%c1, %c0_18] : memref<9x512xf32, #tpu.memory_space<vmem>>, vector<1x512xf32>
    %45 = vector.broadcast %44 : vector<1x512xf32> to vector<16x512xf32>
    %46 = arith.mulf %11, %45 : vector<16x512xf32>
    %47 = arith.addf %43, %46 : vector<16x512xf32>
    %c2 = arith.constant 2 : index
    %c0_19 = arith.constant 0 : index
    %48 = vector.load %arg4[%c2, %c0_19] : memref<9x512xf32, #tpu.memory_space<vmem>>, vector<1x512xf32>
    %49 = vector.broadcast %48 : vector<1x512xf32> to vector<16x512xf32>
    %50 = arith.mulf %22, %49 : vector<16x512xf32>
    %51 = arith.addf %47, %50 : vector<16x512xf32>
    %c1_i32_20 = arith.constant 1 : i32
    %52 = tpu.dynamic_rotate %51 by %c1_i32_20 dim 0 : vector<16x512xf32>, i32 -> vector<16x512xf32>
    %c1_i32_21 = arith.constant 1 : i32
    %53 = vector.broadcast %c1_i32_21 : i32 to vector<16x512xi32>
    %54 = arith.cmpi sge, %39, %53 : vector<16x512xi32>
    %cst_22 = arith.constant 0.000000e+00 : f32
    %55 = vector.broadcast %cst_22 : f32 to vector<16x512xf32>
    %56 = arith.select %54, %52, %55 : vector<16x512xi1>, vector<16x512xf32>
    %57 = arith.addf %40, %56 : vector<16x512xf32>
    %c3 = arith.constant 3 : index
    %c0_23 = arith.constant 0 : index
    %58 = vector.load %arg4[%c3, %c0_23] : memref<9x512xf32, #tpu.memory_space<vmem>>, vector<1x512xf32>
    %59 = vector.broadcast %58 : vector<1x512xf32> to vector<16x512xf32>
    %60 = arith.mulf %17, %59 : vector<16x512xf32>
    %c4 = arith.constant 4 : index
    %c0_24 = arith.constant 0 : index
    %61 = vector.load %arg4[%c4, %c0_24] : memref<9x512xf32, #tpu.memory_space<vmem>>, vector<1x512xf32>
    %62 = vector.broadcast %61 : vector<1x512xf32> to vector<16x512xf32>
    %63 = arith.mulf %11, %62 : vector<16x512xf32>
    %64 = arith.addf %60, %63 : vector<16x512xf32>
    %c5 = arith.constant 5 : index
    %c0_25 = arith.constant 0 : index
    %65 = vector.load %arg4[%c5, %c0_25] : memref<9x512xf32, #tpu.memory_space<vmem>>, vector<1x512xf32>
    %66 = vector.broadcast %65 : vector<1x512xf32> to vector<16x512xf32>
    %67 = arith.mulf %22, %66 : vector<16x512xf32>
    %68 = arith.addf %64, %67 : vector<16x512xf32>
    %69 = arith.addf %57, %68 : vector<16x512xf32>
    %c6 = arith.constant 6 : index
    %c0_26 = arith.constant 0 : index
    %70 = vector.load %arg4[%c6, %c0_26] : memref<9x512xf32, #tpu.memory_space<vmem>>, vector<1x512xf32>
    %71 = vector.broadcast %70 : vector<1x512xf32> to vector<16x512xf32>
    %72 = arith.mulf %17, %71 : vector<16x512xf32>
    %c7 = arith.constant 7 : index
    %c0_27 = arith.constant 0 : index
    %73 = vector.load %arg4[%c7, %c0_27] : memref<9x512xf32, #tpu.memory_space<vmem>>, vector<1x512xf32>
    %74 = vector.broadcast %73 : vector<1x512xf32> to vector<16x512xf32>
    %75 = arith.mulf %11, %74 : vector<16x512xf32>
    %76 = arith.addf %72, %75 : vector<16x512xf32>
    %c8 = arith.constant 8 : index
    %c0_28 = arith.constant 0 : index
    %77 = vector.load %arg4[%c8, %c0_28] : memref<9x512xf32, #tpu.memory_space<vmem>>, vector<1x512xf32>
    %78 = vector.broadcast %77 : vector<1x512xf32> to vector<16x512xf32>
    %79 = arith.mulf %22, %78 : vector<16x512xf32>
    %80 = arith.addf %76, %79 : vector<16x512xf32>
    %c15_i32 = arith.constant 15 : i32
    %81 = tpu.dynamic_rotate %80 by %c15_i32 dim 0 : vector<16x512xf32>, i32 -> vector<16x512xf32>
    %c15_i32_29 = arith.constant 15 : i32
    %82 = vector.broadcast %c15_i32_29 : i32 to vector<16x512xi32>
    %83 = arith.cmpi slt, %39, %82 : vector<16x512xi32>
    %cst_30 = arith.constant 0.000000e+00 : f32
    %84 = vector.broadcast %cst_30 : f32 to vector<16x512xf32>
    %85 = arith.select %83, %81, %84 : vector<16x512xi1>, vector<16x512xf32>
    %86 = arith.addf %69, %85 : vector<16x512xf32>
    %c0_31 = arith.constant 0 : index
    %c0_32 = arith.constant 0 : index
    %87 = vector.load %arg5[%c0_31, %c0_32] : memref<1x512xf32, #tpu.memory_space<vmem>>, vector<1x512xf32>
    %88 = vector.broadcast %87 : vector<1x512xf32> to vector<16x512xf32>
    %89 = arith.addf %86, %88 : vector<16x512xf32>
    %cst_33 = arith.constant 0.000000e+00 : f32
    %cst_34 = arith.constant 6.000000e+00 : f32
    %90 = vector.broadcast %cst_33 : f32 to vector<16x512xf32>
    %91 = arith.maximumf %90, %89 : vector<16x512xf32>
    %92 = vector.broadcast %cst_34 : f32 to vector<16x512xf32>
    %93 = arith.minimumf %92, %91 : vector<16x512xf32>
    %94 = arith.truncf %93 : vector<16x512xf32> to vector<16x512xbf16>
    %c0_35 = arith.constant 0 : index
    %c0_36 = arith.constant 0 : index
    %95 = vector.load %arg6[%c0_35, %c0_36] : memref<512x128xbf16, #tpu.memory_space<vmem>>, vector<512x128xbf16>
    %cst_37 = arith.constant dense<0.000000e+00> : vector<16x128xf32>
    %96 = tpu.matmul %94, %95, %cst_37 {dimension_numbers = #tpu.dot_dimension_numbers<[1], [0], [0], [1], [0, 0, 1, 1], [], []>} : vector<16x512xbf16>, vector<512x128xbf16>, vector<16x128xf32> -> vector<16x128xf32>
    %c0_38 = arith.constant 0 : index
    %c0_39 = arith.constant 0 : index
    %97 = vector.load %arg7[%c0_38, %c0_39] : memref<1x128xf32, #tpu.memory_space<vmem>>, vector<1x128xf32>
    %98 = vector.broadcast %97 : vector<1x128xf32> to vector<16x128xf32>
    %99 = arith.addf %96, %98 : vector<16x128xf32>
    %100 = arith.addf %99, %1 : vector<16x128xf32>
    %101 = vector.shape_cast %100 : vector<16x128xf32> to vector<1x16x128xf32>
    %c0_40 = arith.constant 0 : index
    %c0_41 = arith.constant 0 : index
    %c0_42 = arith.constant 0 : index
    %102 = vector.load %arg8[%c0_40, %c0_41, %c0_42] : memref<1x16x128xf32, #tpu.memory_space<vmem>>, vector<1x16x128xf32>
    tpu.vector_store %arg8[%c0_40, %c0_41, %c0_42], %101 {strides = array<i32>} : memref<1x16x128xf32, #tpu.memory_space<vmem>>, vector<1x16x128xf32>,
    return
  }
  func.func @transform_0(%arg0: i32) -> (i32, i32, i32) {
    %c0_i32 = arith.constant 0 : i32
    %c0_i32_0 = arith.constant 0 : i32
    %c0_i32_1 = arith.constant 0 : i32
    return %arg0, %c0_i32, %c0_i32_0 : i32, i32, i32
  }
  func.func @transform_1(%arg0: i32) -> (i32, i32) {
    %c0_i32 = arith.constant 0 : i32
    %c0_i32_0 = arith.constant 0 : i32
    %c0_i32_1 = arith.constant 0 : i32
    return %c0_i32, %c0_i32_0 : i32, i32
  }
  func.func @transform_2(%arg0: i32) -> (i32, i32) {
    %c0_i32 = arith.constant 0 : i32
    %c0_i32_0 = arith.constant 0 : i32
    %c0_i32_1 = arith.constant 0 : i32
    return %c0_i32, %c0_i32_0 : i32, i32
  }
  func.func @transform_3(%arg0: i32) -> (i32, i32) {
    %c0_i32 = arith.constant 0 : i32
    %c0_i32_0 = arith.constant 0 : i32
    %c0_i32_1 = arith.constant 0 : i32
    return %c0_i32, %c0_i32_0 : i32, i32
  }
  func.func @transform_4(%arg0: i32) -> (i32, i32) {
    %c0_i32 = arith.constant 0 : i32
    %c0_i32_0 = arith.constant 0 : i32
    %c0_i32_1 = arith.constant 0 : i32
    return %c0_i32, %c0_i32_0 : i32, i32
  }
  func.func @transform_5(%arg0: i32) -> (i32, i32) {
    %c0_i32 = arith.constant 0 : i32
    %c0_i32_0 = arith.constant 0 : i32
    %c0_i32_1 = arith.constant 0 : i32
    return %c0_i32, %c0_i32_0 : i32, i32
  }
  func.func @transform_6(%arg0: i32) -> (i32, i32) {
    %c0_i32 = arith.constant 0 : i32
    %c0_i32_0 = arith.constant 0 : i32
    %c0_i32_1 = arith.constant 0 : i32
    return %c0_i32, %c0_i32_0 : i32, i32
  }
  func.func @transform_7(%arg0: i32) -> (i32, i32, i32) {
    %c0_i32 = arith.constant 0 : i32
    %c0_i32_0 = arith.constant 0 : i32
    %c0_i32_1 = arith.constant 0 : i32
    return %arg0, %c0_i32, %c0_i32_0 : i32, i32, i32
  }
}

</mosaic_0001>

<bundles_post_ra>
// kernel: tpu_custom_call.1
= control target key start
LH: loop header
LB: loop body
LE: loop exit
PB: predicated region body
PF: predicated region fallthrough
CT: control target
= control target key end

     0   :  { %s3027_s0 = inlined_call_operand.hbm [shape: f32[2,16,128], index: 0, kind: input, shape index: {}]   ;;  %s3028_s1 = inlined_call_operand.hbm [shape: bf16[128,512], index: 1, kind: input, shape index: {}]   ;;  %s3029_s2 = inlined_call_operand.vmem [shape: f32[1,512], index: 2, kind: input, shape index: {}]   ;;  %s3030_s3 = inlined_call_operand.hbm [shape: f32[9,512], index: 3, kind: input, shape index: {}]   ;;  %s3031_s4 = inlined_call_operand.vmem [shape: f32[1,512], index: 4, kind: input, shape index: {}]   ;;  %s3032_s5 = inlined_call_operand.hbm [shape: bf16[512,128], index: 5, kind: input, shape index: {}]   ;;  %s3033_s6 = inlined_call_operand.vmem [shape: f32[1,128], index: 6, kind: input, shape index: {}]   ;;  %s3034_s7 = inlined_call_operand.hbm [shape: f32[2,16,128], index: 7, kind: output, shape index: {}]  }
   0x1   :  { %3047 = sst [smem:[#allocation30_spill]] %s3028_s1 }
   0x2   :  { %12 = vsyncpa [#allocation3], 0 }
   0x3   :  { %14 = vsyncpa [#allocation3 + $0x1], 0 }
   0x4   :  { %15 = vsyncpa [#allocation6], 0 }
   0x5   :  { %16 = vsyncpa [#allocation9], 0 }
   0x6   :  { %17 = vsyncpa [#allocation4], 0 }
   0x7   :  { %19 = vsyncpa [#allocation4 + $0x1], 0  ;;  %s2237_s24 = smov 0   ;;  %s2239_s25 = smov 0  }
   0x8   :  { %s2241_s26 = smov 0   ;;  %s2243_s27 = smov 0  }
   0x9 LB: > { %s2258_s28 = sadd.s32 4294967295, %s2177_s27   ;;  %s1686_s29 = sadd.s32 4294967294, %s2177_s27   ;;  %s2177_s27 = sphi %s2243_s27, %s3104_s27   ;;  %s2173_s26 = sphi %s2241_s26, %s3103_s26   ;;  %s2169_s25 = sphi %s2239_s25, %s3102_s25   ;;  %s2165_s24 = sphi %s2237_s24, %s3101_s24  }
   0xa   : > { %p45_p0 = scmp.ne.s32.totalorder %s2169_s25, %s2165_s24  ;;  %p3035_p1 = scmp.eq.s32.totalorder %s2258_s28, 0 }
   0xb   : > { %p201_p3 = scmp.eq.s32.totalorder %s1686_s29, 1  ;;  %p1687_p5 = scmp.ge.s32.totalorder %s2177_s27, 1 }
   0xc   : > { %p2267_p4 = por %p3035_p1, %p45_p0  ;;  %p208_p7 = scmp.lt.s32.totalorder %s2177_s27, 3 }
   0xd   : > { %p2272_p6 = por %p201_p3, %p45_p0  ;;  %s2179_s10 = smov [#allocation5]  }
   0xe   : > { %s3048_s30 = scalar_select %p2267_p4, 1, 0 }
   0xf   : > { %s3049_s8 = scalar_select %p2272_p6, 1, 0 }
  0x10   : > { %p2277_p8 = pnand %p1687_p5, %p208_p7  ;;  %s220_s11 = sshll.u32 %s2179_s10, 4  ;;  %s2281_s11 = int_to_ptr.vmem [resolvable:$true] %s220_s11 }
  0x11   : > { %s2180_s13 = smov [#allocation7]   ;;  %s3052_s1 = sld [smem:[#allocation30_spill]] }
  0x12   : > { %s3050_s9 = scalar_select %p2277_p8, 1, 0 }
  0x13   : > { %p1833_p9 = pneg %p2277_p8  ;;  %s236_s14 = sshll.u32 %s2180_s13, 4  ;;  %s2292_s14 = int_to_ptr.vmem [resolvable:$true] %s236_s14 }
  0x15   : > { %p2288_p11 = pnand %p1833_p9, %p3035_p1 }
  0x17   : > { %s1989_s17 = scalar_lea.hbm %s3052_s1, 4096  ;;  %p2302_p13 = pneg %p2288_p11 }
  0x18   : > { %p1990_p12 = scmp.ne.s32.totalorder %s3052_s1, %s1989_s17  ;;  %p1996_p5 = scmp.lt.u32.totalorder %s1989_s17, %s3052_s1 }
  0x1a   : > { %p1992_p0 = pnand %p2302_p13, %p1990_p12 }
  0x1c   : > { %p1993_p3 = pneg %p1992_p0 }
  0x1e   : > { %p1998_p7 = pnand %p1996_p5, %p1993_p3 }
  0x20   : > { %2001 = shalt.err (!%p1998_p7)
}
  0x21   : > { %s2002_s23 = scalar_lea.vmem %s2281_s11, 4096  ;;  %p2010_p2 = scmp.lt.s32.totalorder %s2281_s11, %s2281_s11 }
  0x22   : > { %p2003_p9 = scmp.ne.s32.totalorder %s2281_s11, %s2002_s23  ;;  %p2011_p6 = scmp.lt.s32.totalorder %s2002_s23, %s2002_s23 }
  0x24   : > { %p2005_p10 = pnand %p2003_p9, %p2302_p13  ;;  %p2012_p12 = por %p2011_p6, %p2010_p2 }
  0x26   : > { %p2006_p1 = pneg %p2005_p10 }
  0x28   : > { %p2013_p0 = pnand %p2012_p12, %p2006_p1 }
  0x2a   : > { %2016 = shalt.err (!%p2013_p0)
}
  0x2b   : > { %s2181_s29 = smov 256   ;;  %s2182_s10 = smov 16  }
  0x2c   : > { %1836 = dma.hbm_to_vmem [thread:$0]  (!%p2288_p11), %s3052_s1, 4096, %s2281_s11, [#allocation6], %s2181_s29, %s2181_s29, %s2182_s10  }
  0x2d   : > { %s2017_s18 = scalar_lea.hbm %s3030_s3, 1024 }
  0x2e   : > { %p2018_p2 = scmp.ne.s32.totalorder %s3030_s3, %s2017_s18  ;;  %p2024_p10 = scmp.lt.u32.totalorder %s2017_s18, %s3030_s3 }
  0x30   : > { %p2020_p1 = pnand %p2018_p2, %p2302_p13 }
  0x32   : > { %p2021_p6 = pneg %p2020_p1 }
  0x34   : > { %p2026_p3 = pnand %p2024_p10, %p2021_p6 }
  0x36   : > { %2029 = shalt.err (!%p2026_p3)
}
  0x37   : > { %s2030_s11 = scalar_lea.vmem %s2292_s14, 1024  ;;  %p2038_p12 = scmp.lt.s32.totalorder %s2292_s14, %s2292_s14 }
  0x38   : > { %p2031_p5 = scmp.ne.s32.totalorder %s2292_s14, %s2030_s11  ;;  %p2039_p0 = scmp.lt.s32.totalorder %s2030_s11, %s2030_s11 }
  0x3a   : > { %p2033_p7 = pnand %p2031_p5, %p2302_p13  ;;  %p2040_p2 = por %p2039_p0, %p2038_p12 }
  0x3c   : > { %p2034_p9 = pneg %p2033_p7 }
  0x3e   : > { %p2041_p1 = pnand %p2040_p2, %p2034_p9 }
  0x40   : > { %2044 = shalt.err (!%p2041_p1)
}
  0x41   : > { %s2183_s29 = smov 512   ;;  %s2184_s10 = smov 32  }
  0x42   : > { %1839 = dma.hbm_to_vmem [thread:$0]  (!%p2288_p11), %s3030_s3, 1024, %s2292_s14, [#allocation6], %s2183_s29, %s2183_s29, %s2184_s10  }
  0x43   : > { %s2185_s16 = smov [#allocation8]   ;;  %s2045_s21 = scalar_lea.hbm %s3032_s5, 4096 }
  0x44   : > { %s252_s17 = sshll.u32 %s2185_s16, 4  ;;  %p2046_p6 = scmp.ne.s32.totalorder %s3032_s5, %s2045_s21  ;;  %s253_s17 = int_to_ptr.vmem [resolvable:$true] %s252_s17 }
  0x45   : > { %p2052_p5 = scmp.lt.u32.totalorder %s2045_s21, %s3032_s5 }
  0x46   : > { %p2048_p10 = pnand %p2046_p6, %p2302_p13 }
  0x48   : > { %p2049_p3 = pneg %p2048_p10 }
  0x4a   : > { %p2054_p7 = pnand %p2052_p5, %p2049_p3 }
  0x4c   : > { %2057 = shalt.err (!%p2054_p7)
}
  0x4d   : > { %s2058_s14 = scalar_lea.vmem %s253_s17, 4096  ;;  %p2066_p2 = scmp.lt.s32.totalorder %s253_s17, %s253_s17 }
  0x4e   : > { %p2059_p9 = scmp.ne.s32.totalorder %s253_s17, %s2058_s14  ;;  %p2067_p1 = scmp.lt.s32.totalorder %s2058_s14, %s2058_s14 }
  0x50   : > { %p2061_p12 = pnand %p2059_p9, %p2302_p13  ;;  %p2068_p4 = por %p2067_p1, %p2066_p2 }
  0x52   : > { %p2062_p0 = pneg %p2061_p12 }
  0x54   : > { %p2069_p8 = pnand %p2068_p4, %p2062_p0 }
  0x56   : > { %2072 = shalt.err (!%p2069_p8)
}
  0x57   : > { %s2186_s29 = smov 64   ;;  %s2187_s1 = smov 4  }
  0x58   : > { %1842 = dma.hbm_to_vmem [thread:$0]  (!%p2288_p11), %s3032_s5, 4096, %s253_s17, [#allocation9], %s2186_s29, %s2186_s29, %s2187_s1  }
  0x59   : > { %s2365_s13 = sadd.s32 1, %s2177_s27   ;;  %s32_s16 = sadd.s32 1, %s2173_s26 }
  0x5a   : > { %s29_s15 = ssub.s32 %s2177_s27, %s2365_s13  ;;  %p39_p8 = scmp.ne.s32.totalorder %s2173_s26, %s2169_s25 }
  0x5b   : > { %p30_p4 = scmp.eq.s32.totalorder %s29_s15, 0  ;;  %p40_p13 = scmp.eq.s32.totalorder %s2177_s27, 0 }
  0x5c   : > { %p1854_p6 = scmp.lt.s32.totalorder %s2177_s27, 2  ;;  %p3054_p3 = scmp.eq.s32.totalorder %s2258_s28, 1 }
  0x5d   : > { %s2375_s18 = scalar_select %p30_p4, %s2173_s26, %s32_s16  }
  0x5e   : > { %p41_p10 = por %p40_p13, %p39_p8  ;;  %p2379_p5 = por %p3054_p3, %p39_p8 }
  0x5f   : > { %s269_s12 = sand.u32 1, %s2173_s26   ;;  %s1771_s21 = sshll.u32 %s2177_s27, 8 }
  0x60   : > { %s1692_s17 = sshll.u32 %s269_s12, 4  ;;  %s2388_s11 = scalar_lea.hbm %s3027_s0, %s1771_s21 }
  0x61   : > { %s273_s14 = scalar_lea.vmem [#allocation2], %s1692_s17  ;;  %p2390_p11 = pnand %p1854_p6, %p41_p10 }
  0x62   : > { %s280_s29 = sshll.u32 %s273_s14, 4  ;;  %s2396_s20 = scalar_lea.sflag [#allocation3], %s269_s12  ;;  %s2394_s29 = int_to_ptr.vmem [resolvable:$true] %s280_s29 }
  0x63   : > { %s2073_s10 = scalar_lea.hbm %s2388_s11, 256  ;;  %p2075_p9 = pneg %p2390_p11 }
  0x64   : > { %p2074_p7 = scmp.ne.s32.totalorder %s2388_s11, %s2073_s10  ;;  %s2078_s21 = scalar_lea.hbm %s3027_s0, 512 }
  0x65   : > { %p2079_p2 = scmp.lt.u32.totalorder %s2388_s11, %s3027_s0  ;;  %p2080_p1 = scmp.lt.u32.totalorder %s2078_s21, %s2073_s10 }
  0x66   : > { %p2076_p12 = pnand %p2075_p9, %p2074_p7  ;;  %p2082_p8 = scmp.lt.u32.totalorder %s2073_s10, %s2388_s11 }
  0x67   : > { %p2081_p4 = por %p2080_p1, %p2079_p2 }
  0x68   : > { %p2077_p0 = pneg %p2076_p12 }
  0x69   : > { %p2083_p13 = por %p2082_p8, %p2081_p4 }
  0x6b   : > { %p2084_p6 = pnand %p2083_p13, %p2077_p0 }
  0x6d   : > { %2087 = shalt.err (!%p2084_p6)
}
  0x6e   : > { %s2088_s12 = scalar_lea.vmem %s2394_s29, 256  ;;  %s2188_s23 = smov [#allocation2]  }
  0x6f   : > { %p2089_p10 = scmp.ne.s32.totalorder %s2394_s29, %s2088_s12  ;;  %s2093_s14 = sshll.u32 %s2188_s23, 4  ;;  %s2094_s14 = int_to_ptr.vmem [resolvable:$false] %s2093_s14 }
  0x70   : > { %s2095_s15 = scalar_lea.vmem %s2094_s14, 512  ;;  %p2096_p12 = scmp.lt.s32.totalorder %s2394_s29, %s2094_s14 }
  0x71   : > { %p2091_p3 = pnand %p2089_p10, %p2075_p9  ;;  %p2097_p2 = scmp.lt.s32.totalorder %s2095_s15, %s2088_s12 }
  0x73   : > { %p2092_p7 = pneg %p2091_p3  ;;  %p2098_p1 = por %p2097_p2, %p2096_p12 }
  0x75   : > { %p2099_p4 = pnand %p2098_p1, %p2092_p7 }
  0x77   : > { %2102 = shalt.err (!%p2099_p4)
}
  0x78   : > { %s2189_s10 = smov 128   ;;  %s2190_s16 = smov 8  }
  0x79   : > { %1846 = dma.hbm_to_vmem [thread:$0]  (!%p2390_p11), %s2388_s11, 256, %s2394_s29, %s2396_s20, %s2189_s10, %s2189_s10, %s2190_s16  }
  0x7a   : > { %p3057_p9 = scmp.ne.s32.totalorder %s3050_s9, 0 }
  0x7c   : > { %292 = sbr.rel (%p3057_p9) target bundleno = 815 (0x32f), region = 48 }
  0x83   : > { %s2427_s21 = sand.u32 1, %s2169_s25   ;;  %p3058_p0 = scmp.ne.s32.totalorder %s3048_s30, 0 }
  0x84   : > { %s1696_s17 = sshll.u32 %s2427_s21, 4  ;;  %s295_s22 = scalar_lea.sflag [#allocation3], %s2427_s21 }
  0x85   : > { %s2433_s12 = scalar_lea.vmem [#allocation2], %s1696_s17 }
  0x86   : > { %2148 = dma.done.wait (%p3058_p0), %s295_s22, 256  }
  0x87   : > { %2150 = vsyncadd (%p3058_p0), %s295_s22, 4294967040  ;;  %p3059_p11 = scmp.eq.s32.totalorder %s2258_s28, 0 }
  0x89   : > { %2152 = dma.done.wait (%p3059_p11), [#allocation6], 5120   ;;  %p3060_p8 = pmov %p3059_p11 }
  0x8b   : > { %2154 = vsyncadd (%p3060_p8), [#allocation6], 4294962176  ;;  %p3061_p13 = pmov %p3060_p8 }
  0x8c   : > { %p3062_p6 = pmov %p3060_p8 }
  0x8d   : > { %2156 = dma.done.wait (%p3061_p13), [#allocation9], 4096  }
  0x8e   : > { %2158 = vsyncadd (%p3062_p6), [#allocation9], 4294963200  ;;  %v2191_v0 = vmov 0   ;;  %v1907_v1 = vld [vmem:[#allocation5 + $0x4] ss:$16 sps:$4 sm:$0xff]   ;;  %v343_v34 = vld [vmem:[%s2433_s12 + $0x8] sm:$0xff]  ;;  %v379_v36 = vlaneseq }
  0x8f   : > { %591 = vmatprep.mubr.bf16.mxu0 %v2191_v0  ;;  %634 = vmatprep.mubr.bf16.mxu1 %v2191_v0  ;;  %v1909_v2 = vld [vmem:[#allocation5 + $0xc] ss:$16 sps:$4 sm:$0xff]   ;;  %v1911_v3 = vld [vmem:[#allocation5] ss:$16 sps:$4 sm:$0xff]   ;;  %v1912_v4 = vld [vmem:[#allocation5 + $0x8] ss:$16 sps:$4 sm:$0xff]  }
  0x90   : > { %559 = vmatprep.subr.bf16.mxu0 %v1907_v1  ;;  %602 = vmatprep.subr.bf16.mxu1 %v1909_v2  ;;  %v1913_v5 = vld [vmem:[#allocation5 + $0x24] ss:$16 sps:$4 sm:$0xff]   ;;  %v1915_v6 = vld [vmem:[#allocation5 + $0x2c] ss:$16 sps:$4 sm:$0xff]   ;;  %v1917_v7 = vld [vmem:[#allocation5 + $0x20] ss:$16 sps:$4 sm:$0xff]  }
  0x91   : > { %560 = vmatpush1.bf16.msra.mxu0 %v1911_v3  ;;  %603 = vmatpush1.bf16.msra.mxu1 %v1912_v4  ;;  %v1918_v8 = vld [vmem:[#allocation5 + $0x28] ss:$16 sps:$4 sm:$0xff]   ;;  %v1919_v9 = vld [vmem:[#allocation5 + $0x44] ss:$16 sps:$4 sm:$0xff]   ;;  %v1921_v10 = vld [vmem:[#allocation5 + $0x4c] ss:$16 sps:$4 sm:$0xff]  }
  0x92   : > { %561 = vmatprep.subr.bf16.mxu0 %v1913_v5  ;;  %604 = vmatprep.subr.bf16.mxu1 %v1915_v6  ;;  %v1923_v11 = vld [vmem:[#allocation5 + $0x40] ss:$16 sps:$4 sm:$0xff]   ;;  %v1924_v12 = vld [vmem:[#allocation5 + $0x48] ss:$16 sps:$4 sm:$0xff]   ;;  %v1925_v13 = vld [vmem:[#allocation5 + $0x64] ss:$16 sps:$4 sm:$0xff]  }
  0x93   : > { %v1927_v14 = vld [vmem:[#allocation5 + $0x6c] ss:$16 sps:$4 sm:$0xff]   ;;  %v1929_v15 = vld [vmem:[#allocation5 + $0x60] ss:$16 sps:$4 sm:$0xff]   ;;  %v1930_v16 = vld [vmem:[#allocation5 + $0x68] ss:$16 sps:$4 sm:$0xff]  }
  0x94   : > { %v1931_v17 = vld [vmem:[#allocation5 + $0x84] ss:$16 sps:$4 sm:$0xff]   ;;  %v1933_v18 = vld [vmem:[#allocation5 + $0x8c] ss:$16 sps:$4 sm:$0xff]   ;;  %v1935_v19 = vld [vmem:[#allocation5 + $0x80] ss:$16 sps:$4 sm:$0xff]  }
  0x95   : > { %562 = vmatpush1.bf16.msra.mxu0 %v1917_v7  ;;  %605 = vmatpush1.bf16.msra.mxu1 %v1918_v8  ;;  %v1936_v20 = vld [vmem:[#allocation5 + $0x88] ss:$16 sps:$4 sm:$0xff]   ;;  %v1937_v21 = vld [vmem:[#allocation5 + $0xa4] ss:$16 sps:$4 sm:$0xff]   ;;  %v1939_v22 = vld [vmem:[#allocation5 + $0xac] ss:$16 sps:$4 sm:$0xff]  }
  0x96   : > { %563 = vmatprep.subr.bf16.mxu0 %v1919_v9  ;;  %606 = vmatprep.subr.bf16.mxu1 %v1921_v10  ;;  %v1941_v23 = vld [vmem:[#allocation5 + $0xa0] ss:$16 sps:$4 sm:$0xff]   ;;  %v1942_v24 = vld [vmem:[#allocation5 + $0xa8] ss:$16 sps:$4 sm:$0xff]   ;;  %v1943_v25 = vld [vmem:[#allocation5 + $0xc4] ss:$16 sps:$4 sm:$0xff]  }
  0x97   : > { %v1945_v26 = vld [vmem:[#allocation5 + $0xcc] ss:$16 sps:$4 sm:$0xff]   ;;  %v1947_v27 = vld [vmem:[#allocation5 + $0xc0] ss:$16 sps:$4 sm:$0xff]   ;;  %v1948_v28 = vld [vmem:[#allocation5 + $0xc8] ss:$16 sps:$4 sm:$0xff]  }
  0x98   : > { %v1949_v29 = vld [vmem:[#allocation5 + $0xe4] ss:$16 sps:$4 sm:$0xff]   ;;  %v1951_v30 = vld [vmem:[#allocation5 + $0xec] ss:$16 sps:$4 sm:$0xff]   ;;  %v1953_v31 = vld [vmem:[#allocation5 + $0xe0] ss:$16 sps:$4 sm:$0xff]  }
  0x99   : > { %564 = vmatpush1.bf16.msra.mxu0 %v1923_v11  ;;  %607 = vmatpush1.bf16.msra.mxu1 %v1924_v12  ;;  %v1954_v32 = vld [vmem:[#allocation5 + $0xe8] ss:$16 sps:$4 sm:$0xff]   ;;  %v342_v33 = vld [vmem:[%s2433_s12] sm:$0xff]  ;;  %v2450_v37 = vshrl.u32 %v379_v36, 7  ;;  %s2192_s11 = smov 32   ;;  %s2193_s29 = smov 96  }
  0x9a   : > { %565 = vmatprep.subr.bf16.mxu0 %v1925_v13  ;;  %608 = vmatprep.subr.bf16.mxu1 %v1927_v14  ;;  %v344_v35 = vpack.c.bf16 %v343_v34, %v342_v33  ;;  %v377_v40 = vld [vmem:[%s3029_s2] sm:$0xf]  ;;  %v1957_v10 = vld [vmem:[#allocation8 + $0x48] sm:$0xff]   ;;  %s340_s15 = scalar_lea.vmem [#allocation10], %s1696_s17  ;;  %s1772_s16 = sshll.u32 %s2258_s28, 8 }
  0x9b   : > { %v2453_v38 = vsub.s32 0, %v2450_v37  ;;  %v2456_v39 = vsub.s32 2, %v2450_v37  ;;  %v2462_v41 = vsub.s32 1, %v2450_v37  ;;  %v2470_v61 = vsub.s32 3, %v2450_v37  ;;  %v1955_v5 = vld [vmem:[#allocation8 + $0x40] sm:$0xff]   ;;  %v1973_v33 = vld [vmem:[#allocation8 + $0x68] sm:$0xff]   ;;  %s2982_s17 = scalar_lea.hbm %s3034_s7, %s1772_s16 }
  0x9c   : > { %v1956_v8 = vld [vmem:[#allocation8] sm:$0xff]   ;;  %vm883_vm4 = vcmp.lt.s32.totalorder %v2450_v37, 1  ;;  %vm1144_vm6 = vcmp.lt.s32.totalorder %v2450_v37, 7  ;;  %s1584_s10 = sshll.u32 %s340_s15, 4  ;;  %s1571_s9 = scalar_lea.sflag [#allocation4], %s2427_s21  ;;  %s2977_s10 = int_to_ptr.vmem [resolvable:$true] %s1584_s10 }
  0x9d   : > { %566 = vmatpush1.bf16.msra.mxu0 %v1929_v15  ;;  %609 = vmatpush1.bf16.msra.mxu1 %v1930_v16  ;;  %v382_v42 = vrot.slane %v377_v40, %v2453_v38  ;;  %v390_v43 = vrot.slane %v377_v40, %v2456_v39  ;;  %v386_v44 = vrot.slane %v377_v40, %v2462_v41  ;;  %v1958_v11 = vld [vmem:[#allocation8 + $0xc0] sm:$0xff]   ;;  %v1959_v15 = vld [vmem:[#allocation8 + $0x8] sm:$0xff]   ;;  %s2194_s28 = smov [#allocation10]  }
  0x9e   : > { %567 = vmatprep.subr.bf16.mxu0 %v1931_v17  ;;  %610 = vmatprep.subr.bf16.mxu1 %v1933_v18  ;;  %v394_v1 = vrot.slane %v377_v40, %v2470_v61  ;;  %v1960_v16 = vld [vmem:[#allocation8 + $0x80] sm:$0xff]  }
  0x9f   : > { %v1974_v34 = vld [vmem:[#allocation8 + $0xe0] sm:$0xff]  }
  0xa0   : > { %v1976_v40 = vld [vmem:[#allocation8 + $0xa0] sm:$0xff]  }
  0xa1   : > { %568 = vmatpush1.bf16.msra.mxu0 %v1935_v19  ;;  %611 = vmatpush1.bf16.msra.mxu1 %v1936_v20  ;;  %v1961_v20 = vld [vmem:[#allocation8 + $0x50] sm:$0xff]  }
  0xa2   : > { %569 = vmatprep.subr.bf16.mxu0 %v1937_v21  ;;  %612 = vmatprep.subr.bf16.mxu1 %v1939_v22  ;;  %v1962_v21 = vld [vmem:[#allocation8 + $0xc8] sm:$0xff]   ;;  %v1963_v22 = vld [vmem:[#allocation8 + $0x10] sm:$0xff]  }
  0xa5   : > { %570 = vmatpush1.bf16.msra.mxu0 %v1941_v23  ;;  %613 = vmatpush1.bf16.msra.mxu1 %v1942_v24  ;;  %v1964_v23 = vld [vmem:[#allocation8 + $0x88] sm:$0xff]  }
  0xa6   : > { %571 = vmatprep.subr.bf16.mxu0 %v1943_v25  ;;  %614 = vmatprep.subr.bf16.mxu1 %v1945_v26  ;;  %v1965_v25 = vld [vmem:[#allocation8 + $0x58] sm:$0xff]   ;;  %v1966_v26 = vld [vmem:[#allocation8 + $0xd0] sm:$0xff]  }
  0xa9   : > { %572 = vmatpush1.bf16.msra.mxu0 %v1947_v27  ;;  %615 = vmatpush1.bf16.msra.mxu1 %v1948_v28  ;;  %v1967_v27 = vld [vmem:[#allocation8 + $0x18] sm:$0xff]   ;;  %v1968_v28 = vld [vmem:[#allocation8 + $0x90] sm:$0xff]  }
  0xaa   : > { %573 = vmatprep.subr.bf16.mxu0 %v1949_v29  ;;  %616 = vmatprep.subr.bf16.mxu1 %v1951_v30  ;;  %v1969_v29 = vld [vmem:[#allocation8 + $0x60] sm:$0xff]   ;;  %v1970_v30 = vld [vmem:[#allocation8 + $0xd8] sm:$0xff]  }
  0xad   : > { %574 = vmatpush1.bf16.msra.mxu0 %v1953_v31  ;;  %617 = vmatpush1.bf16.msra.mxu1 %v1954_v32  ;;  %v1971_v31 = vld [vmem:[#allocation8 + $0x20] sm:$0xff]   ;;  %v1972_v32 = vld [vmem:[#allocation8 + $0x98] sm:$0xff]  }
  0xae   : > { %1773 = vmatprep.subr.bf16.mxu0 %v1955_v5  ;;  %1795 = vmatprep.subr.bf16.mxu1 %v1958_v11 }
  0xb0   : > { %592 = vmatmul.mubr.bf16.vlgmr.msra.gmra.mrb[0].mxu0 %v344_v35  ;;  %635 = vmatmul.mubr.bf16.vlgmr.msra.gmra.mrb[0].mxu1 %v344_v35  ;;  %v1975_v35 = vld [vmem:[#allocation8 + $0x28] sm:$0xff]  }
  0xb1   : > { %1774 = vmatpush3.bf16.msra.mxu0 %v1956_v8  ;;  %1796 = vmatpush3.bf16.msra.mxu1 %v1960_v16 }
  0xb2   : > { %1775 = vmatprep.subr.bf16.mxu0 %v1957_v10  ;;  %1797 = vmatprep.subr.bf16.mxu1 %v1962_v21 }
  0xb5   : > { %1776 = vmatpush3.bf16.msra.mxu0 %v1959_v15  ;;  %1798 = vmatpush3.bf16.msra.mxu1 %v1964_v23 }
  0xb6   : > { %1777 = vmatprep.subr.bf16.mxu0 %v1961_v20  ;;  %1799 = vmatprep.subr.bf16.mxu1 %v1966_v26 }
  0xb9   : > { %1778 = vmatpush3.bf16.msra.mxu0 %v1963_v22  ;;  %1800 = vmatpush3.bf16.msra.mxu1 %v1968_v28 }
  0xba   : > { %1779 = vmatprep.subr.bf16.mxu0 %v1965_v25  ;;  %1801 = vmatprep.subr.bf16.mxu1 %v1970_v30 }
  0xbd   : > { %1780 = vmatpush3.bf16.msra.mxu0 %v1967_v27  ;;  %1802 = vmatpush3.bf16.msra.mxu1 %v1972_v32 }
  0xbe   : > { %1781 = vmatprep.subr.bf16.mxu0 %v1969_v29  ;;  %1803 = vmatprep.subr.bf16.mxu1 %v1974_v34 }
  0xc1   : > { %1782 = vmatpush3.bf16.msra.mxu0 %v1971_v31  ;;  %1804 = vmatpush3.bf16.msra.mxu1 %v1976_v40 }
  0xc2   : > { %1783 = vmatprep.subr.bf16.mxu0 %v1973_v33 }
  0xc5   : > { %1784 = vmatpush3.bf16.msra.mxu0 %v1975_v35 }
 0x183   : > { %v593_v45 = vpop.f32.mrb[0].mxu0  ;;  %v636_v46 = vpop.f32.mrb[0].mxu1 }
 0x184   : > { %v594_v47 = vadd.f32 %v593_v45, %v382_v42  ;;  %v637_v48 = vadd.f32 %v636_v46, %v390_v43  ;;  %v595_v49 = vpop.f32.mrb[1].mxu0  ;;  %v638_v50 = vpop.f32.mrb[1].mxu1  ;;  %v1980_v45 = vld [vmem:[#allocation8 + $0xa8] sm:$0xff]   ;;  %v1981_v46 = vld [vmem:[#allocation8 + $0x78] sm:$0xff]  }
 0x185   : > { %v596_v51 = vadd.f32 %v595_v49, %v386_v44  ;;  %v597_v52 = vpop.f32.mrb[2].mxu0  ;;  %v640_v53 = vpop.f32.mrb[2].mxu1  ;;  %v639_v4 = vadd.f32 %v638_v50, %v394_v1  ;;  %v1984_v49 = vld [vmem:[#allocation8 + $0xb0] sm:$0xff]   ;;  %v1985_v50 = vld [vmem:[#allocation8 + $0xf8] sm:$0xff]  }
 0x186   : > { %v645_v54 = vmax.f32 %v594_v47, 0.0  ;;  %v647_v55 = vmax.f32 %v637_v48, 0.0  ;;  %v641_v56 = vadd.f32 %v640_v53, %v390_v43  ;;  %v599_v57 = vpop.f32.mrb[3].mxu0  ;;  %v642_v58 = vpop.f32.mrb[3].mxu1  ;;  %v598_v2 = vadd.f32 %v597_v52, %v382_v42  ;;  %v1977_v42 = vld [vmem:[#allocation8 + $0x70] sm:$0xff]   ;;  %v1978_v43 = vld [vmem:[#allocation8 + $0xe8] sm:$0xff]  }
 0x187   : > { %v646_v59 = vmax.f32 %v596_v51, 0.0  ;;  %v600_v7 = vadd.f32 %v599_v57, %v386_v44  ;;  %v648_v9 = vmax.f32 %v639_v4, 0.0  ;;  %v643_v14 = vadd.f32 %v642_v58, %v394_v1  ;;  %v1979_v44 = vld [vmem:[#allocation8 + $0x30] sm:$0xff]   ;;  %1785 = vmatprep.subr.bf16.mxu0 %v1977_v42  ;;  %1805 = vmatprep.subr.bf16.mxu1 %v1978_v43  ;;  %v1983_v48 = vld [vmem:[#allocation8 + $0x38] sm:$0xff]  }
 0x188   : > { %v2467_v60 = vmin.f32 %v645_v54, 6.0  ;;  %v651_v63 = vmax.f32 %v641_v56, 0.0  ;;  %v2474_v0 = vmin.f32 %v647_v55, 6.0  ;;  %v649_v6 = vmax.f32 %v598_v2, 0.0  ;;  %v1982_v47 = vld [vmem:[#allocation8 + $0xf0] sm:$0xff]   ;;  %1786 = vmatpush3.bf16.msra.mxu0 %v1979_v44  ;;  %1806 = vmatpush3.bf16.msra.mxu1 %v1980_v45  ;;  %v1986_v51 = vld [vmem:[#allocation8 + $0xb8] sm:$0xff]  }
 0x189   : > { %v2472_v62 = vmin.f32 %v646_v59, 6.0  ;;  %v650_v13 = vmax.f32 %v600_v7, 0.0  ;;  %v2497_v17 = vmin.f32 %v648_v9, 6.0  ;;  %v652_v19 = vmax.f32 %v643_v14, 0.0  ;;  %1787 = vmatprep.subr.bf16.mxu0 %v1981_v46  ;;  %1807 = vmatprep.subr.bf16.mxu1 %v1982_v47 }
 0x18a   : > { %666 = vrot.lane.b32.xlu0 %v2467_v60, %s2192_s11  ;;  %v2481_v3 = vmin.f32 %v651_v63, 6.0  ;;  %v2491_v12 = vmin.f32 %v649_v6, 6.0  ;;  %v798_v52 = vld [vmem:[#allocation7 + $0x1] ss:$8 sm:$0xf]  ;;  %v2520_v55 = vand.u32 127, %v379_v36 }
 0x18b   : > { %670 = vrot.lane.b32.xlu1 %v2472_v62, %s2192_s11  ;;  %v2499_v18 = vmin.f32 %v650_v13, 6.0  ;;  %v2505_v24 = vmin.f32 %v652_v19, 6.0  ;;  %v942_v53 = vld [vmem:[#allocation7 + $0x4] ss:$8 sm:$0xf]  ;;  %v807_v57 = vrot.slane %v798_v52, %v2462_v41  ;;  %v811_v2 = vrot.slane %v798_v52, %v2456_v39 }
 0x18c   : > { %1788 = vmatpush3.bf16.msra.mxu0 %v1983_v48  ;;  %1808 = vmatpush3.bf16.msra.mxu1 %v1984_v49  ;;  %v1059_v54 = vld [vmem:[#allocation7 + $0x7] ss:$8 sm:$0xf]  ;;  %v767_v56 = vld [vmem:[#allocation7] ss:$8 sm:$0xf]  ;;  %v951_v59 = vrot.slane %v942_v53, %v2462_v41  ;;  %v955_v4 = vrot.slane %v942_v53, %v2456_v39  ;;  %v803_v6 = vrot.slane %v798_v52, %v2453_v38 }
 0x18d   : > { %1809 = vmatprep.subr.bf16.mxu1 %v1985_v50  ;;  %v911_v58 = vld [vmem:[#allocation7 + $0x3] ss:$8 sm:$0xf]  ;;  %v1028_v63 = vld [vmem:[#allocation7 + $0x6] ss:$8 sm:$0xf]  ;;  %v1068_v1 = vrot.slane %v1059_v54, %v2462_v41  ;;  %v1072_v5 = vrot.slane %v1059_v54, %v2456_v39  ;;  %v947_v36 = vrot.slane %v942_v53, %v2453_v38  ;;  %v1064_v7 = vrot.slane %v1059_v54, %v2453_v38 }
 0x18e   : > { %674 = vrot.lane.b32.xlu0 %v2474_v0, %s2192_s11  ;;  %vm682_vm0 = vcmp.lt.s32.totalorder %v2520_v55, 32  ;;  %v815_v8 = vrot.slane %v798_v52, %v2470_v61  ;;  %v959_v9 = vrot.slane %v942_v53, %v2470_v61  ;;  %v1076_v10 = vrot.slane %v1059_v54, %v2470_v61  ;;  %v981_v49 = vld [vmem:[#allocation7 + $0x5] ss:$8 sm:$0xf] }
 0x18f   : > { %676 = vrot.lane.b32.xlu1 %v2481_v3, %s2192_s11  ;;  %v2538_v13 = vrot.slane %v767_v56, %v2462_v41  ;;  %v2541_v14 = vrot.slane %v911_v58, %v2462_v41  ;;  %v2544_v15 = vrot.slane %v1028_v63, %v2462_v41  ;;  %v2547_v16 = vrot.slane %v767_v56, %v2456_v39 }
 0x190   : > { %1810 = vmatpush3.bf16.msra.mxu1 %v1986_v51  ;;  %v2550_v20 = vmul.f32 %v811_v2, %v2474_v0  ;;  %v2553_v21 = vrot.slane %v911_v58, %v2456_v39  ;;  %v2556_v22 = vmul.f32 %v955_v4, %v2474_v0  ;;  %v2559_v23 = vrot.slane %v1028_v63, %v2456_v39  ;;  %v1098_v51 = vld [vmem:[#allocation7 + $0x20] ss:$8 sm:$0xf] }
 0x191   : > { %3063 = vst [vmem:[#allocation15_spill] sm:$0xff] %v2541_v14  ;;  %3064 = vst [vmem:[#allocation16_spill] sm:$0xff] %v2544_v15  ;;  %v2562_v25 = vmul.f32 %v807_v57, %v2472_v62  ;;  %v2565_v26 = vmul.f32 %v951_v59, %v2472_v62  ;;  %v2568_v27 = vmul.f32 %v1068_v1, %v2472_v62  ;;  %vm691_vm1 = vcmp.ge.s32.totalorder %v2520_v55, 32 }
 0x192   : > { %711 = vrot.lane.b32.xlu0 %v2474_v0, %s2193_s29  ;;  %v2571_v28 = vmul.f32 %v1072_v5, %v2474_v0  ;;  %v2574_v29 = vrot.slane %v767_v56, %v2453_v38  ;;  %v2577_v30 = vrot.slane %v767_v56, %v2470_v61  ;;  %v2580_v31 = vmul.f32 %v815_v8, %v2497_v17 }
 0x193   : > { %713 = vrot.lane.b32.xlu1 %v2481_v3, %s2193_s29  ;;  %v2583_v32 = vrot.slane %v911_v58, %v2453_v38  ;;  %v2591_v0 = vmul.f32 %v959_v9, %v2497_v17  ;;  %v2594_v34 = vrot.slane %v1028_v63, %v2453_v38  ;;  %v2597_v35 = vrot.slane %v1028_v63, %v2470_v61 }
 0x194   : > { %v2602_v42 = vmul.f32 %v1076_v10, %v2497_v17  ;;  %v2605_v43 = vmul.f32 %v803_v6, %v2467_v60  ;;  %v2608_v44 = vmul.f32 %v947_v36, %v2467_v60  ;;  %v2611_v45 = vmul.f32 %v1064_v7, %v2467_v60 }
 0x195   : > { %v2614_v46 = vmul.f32 %v811_v2, %v2481_v3  ;;  %v2617_v47 = vmul.f32 %v955_v4, %v2481_v3  ;;  %v2620_v48 = vmul.f32 %v1072_v5, %v2481_v3  ;;  %v2623_v50 = vmul.f32 %v815_v8, %v2505_v24 }
 0x196   : > { %703 = vrot.lane.b32.xlu0 %v2467_v60, %s2193_s29  ;;  %v2627_v60 = vmul.f32 %v959_v9, %v2505_v24  ;;  %v2630_v52 = vmul.f32 %v1076_v10, %v2505_v24  ;;  %v2633_v53 = vmul.f32 %v803_v6, %v2491_v12  ;;  %v2636_v3 = vadd.s32 8, %v2450_v37 }
 0x197   : > { %705 = vrot.lane.b32.xlu1 %v2491_v12, %s2193_s29  ;;  %v2641_v56 = vmul.f32 %v807_v57, %v2499_v18  ;;  %v2647_v63 = vmul.f32 %v951_v59, %v2499_v18  ;;  %v2664_v6 = vmul.f32 %v1068_v1, %v2499_v18  ;;  %vm719_vm2 = vcmp.lt.s32.totalorder %v2520_v55, 96 }
 0x198   : > { %3065 = vst [vmem:[#allocation17_spill] sm:$0xff] %v2633_v53  ;;  %3066 = vst [vmem:[#allocation18_spill] sm:$0xff] %v2636_v3  ;;  %v2680_v8 = vrot.slane %v1098_v51, %v2462_v41  ;;  %v2685_v9 = vadd.s32 384, %v2520_v55  ;;  %v2710_v3 = vrot.slane %v981_v49, %v2470_v61 }
 0x199   : > { %3067 = vst [vmem:[#allocation19_spill] sm:$0xff] %v2641_v56  ;;  %3069 = vst [vmem:[#allocation21_spill] sm:$0xff] %v2647_v63 }
 0x19a   : > { %678 = vrot.lane.b32.xlu0 %v2497_v17, %s2192_s11  ;;  %3072 = vst [vmem:[#allocation24_spill] sm:$0xff] %v2664_v6  ;;  %v1171_v6 = vld [vmem:[%s3031_s4] sm:$0xf]  ;;  %3075 = vst [vmem:[#allocation27_spill] sm:$0xff] %v2710_v3  ;;  %vm731_vm3 = vcmp.lt.s32.totalorder %v2685_v9, 480 }
 0x19b   : > { %672 = vrot.lane.b32.xlu1 %v2499_v18, %s2192_s11 }
 0x19e   : > { %707 = vrot.lane.b32.xlu0 %v2472_v62, %s2193_s29  ;;  %v2588_v62 = vrot.slane %v911_v58, %v2470_v61  ;;  %v2644_v58 = vmul.f32 %v947_v36, %v2491_v12  ;;  %v2673_v36 = vrot.slane %v981_v49, %v2462_v41 }
 0x19f   : > { %680 = vrot.lane.b32.xlu1 %v2505_v24, %s2192_s11 }
 0x1a0   : > { %3068 = vst [vmem:[#allocation20_spill] sm:$0xff] %v2644_v58 }
 0x1a2   : > { %668 = vrot.lane.b32.xlu0 %v2491_v12, %s2192_s11  ;;  %s2103_s11 = scalar_lea.vmem %s2977_s10, 256 }
 0x1a3   : > { %709 = vrot.lane.b32.xlu1 %v2499_v18, %s2193_s29  ;;  %p2104_p10 = scmp.ne.s32.totalorder %s2977_s10, %s2103_s11 }
 0x1a5   : > { %p2105_p3 = pnand %p2104_p10, %p2379_p5 }
 0x1a6   : > { %715 = vrot.lane.b32.xlu0 %v2497_v17, %s2193_s29  ;;  %v837_v17 = vld [vmem:[#allocation7 + $0x2] ss:$8 sm:$0xf] }
 0x1a7   : > { %717 = vrot.lane.b32.xlu1 %v2505_v24, %s2193_s29  ;;  %v2650_v24 = vmul.f32 %v1064_v7, %v2491_v12  ;;  %v2661_v57 = vrot.slane %v837_v17, %v2453_v38  ;;  %v2667_v59 = vrot.slane %v837_v17, %v2462_v41  ;;  %v2670_v12 = vrot.slane %v981_v49, %v2453_v38  ;;  %p2106_p7 = pneg %p2105_p3  ;;  %s2107_s29 = sshll.u32 %s2194_s28, 4  ;;  %s2108_s29 = int_to_ptr.vmem [resolvable:$false] %s2107_s29 }
 0x1a8   : > { %v2676_v7 = vrot.slane %v1098_v51, %v2453_v38  ;;  %v2701_v56 = vrot.slane %v837_v17, %v2456_v39  ;;  %s2109_s1 = scalar_lea.vmem %s2108_s29, 512  ;;  %p2110_p12 = scmp.lt.s32.totalorder %s2977_s10, %s2108_s29 }
 0x1a9   : > { %3070 = vst [vmem:[#allocation22_spill] sm:$0xff] %v2650_v24  ;;  %p2111_p2 = scmp.lt.s32.totalorder %s2109_s1, %s2103_s11 }
 0x1aa   : > { %3073 = vst [vmem:[#allocation25_spill] sm:$0xff] %v2701_v56  ;;  %v2722_v56 = vrot.slane %v1171_v6, %v2453_v38 }
 0x1ab   : > { %p2112_p1 = por %p2111_p2, %p2110_p12 }
 0x1ad   : > { %p2113_p4 = pnand %p2112_p1, %p2106_p7 }
 0x1fc   : > { %v2535_v11 = vpop.permute.xlu0 %666 }
 0x1fd   : > { %v671_v19 = vpop.permute.xlu1 %670 }
 0x1fe   : > { %v687_v2 = vsel %vm682_vm0, %v2535_v11, %v671_v19 }
 0x1ff   : > { %v790_v10 = vmul.f32 %v2538_v13, %v687_v2  ;;  %v1051_v24 = vmul.f32 %v2544_v15, %v687_v2  ;;  %v2713_v15 = vrot.slane %v1098_v51, %v2456_v39 }
 0x200   : > { %v2585_v33 = vpop.permute.xlu0 %674 }
 0x201   : > { %v2599_v40 = vpop.permute.xlu1 %676  ;;  %v685_v4 = vsel %vm682_vm0, %v671_v19, %v2585_v33  ;;  %v934_v19 = vmul.f32 %v2541_v14, %v687_v2  ;;  %v2707_v2 = vrot.slane %v837_v17, %v2470_v61  ;;  %3076 = vst [vmem:[#allocation28_spill] sm:$0xff] %v2713_v15  ;;  %v2716_v14 = vrot.slane %v1098_v51, %v2470_v61 }
 0x202   : > { %v791_v58 = vmul.f32 %v2547_v16, %v685_v4  ;;  %v935_v18 = vmul.f32 %v2553_v21, %v685_v4  ;;  %v1052_v1 = vmul.f32 %v2559_v23, %v685_v4  ;;  %v2719_v4 = vrot.slane %v1171_v6, %v2462_v41 }
 0x203   : > { %v2728_v17 = vrot.slane %v1171_v6, %v2456_v39  ;;  %v973_v3 = vadd.f32 %v2565_v26, %v934_v19  ;;  %v1090_v15 = vadd.f32 %v2568_v27, %v1051_v24 }
 0x204   : > { %v2638_v54 = vpop.permute.xlu0 %711  ;;  %3077 = vst [vmem:[#allocation29_spill] sm:$0xff] %v2719_v4  ;;  %v2734_v51 = vadd.f32 %v2550_v20, %v791_v58  ;;  %v2737_v4 = vadd.f32 %v2556_v22, %v935_v18  ;;  %v2740_v38 = vadd.f32 %v2571_v28, %v1052_v1 }
 0x205   : > { %v2658_v5 = vpop.permute.xlu1 %713 }
 0x206   : > { %3071 = vst [vmem:[#allocation23_spill] sm:$0xff] %v2658_v5  ;;  %v2704_v5 = vrot.slane %v981_v49, %v2456_v39  ;;  %v829_v49 = vadd.f32 %v2562_v25, %v790_v10 }
 0x208   : > { %v2691_v53 = vpop.permute.xlu0 %703  ;;  %3074 = vst [vmem:[#allocation26_spill] sm:$0xff] %v2704_v5  ;;  %v2725_v5 = vrot.slane %v1171_v6, %v2470_v61 }
 0x209   : > { %v2698_v63 = vpop.permute.xlu1 %705 }
 0x20c   : > { %v679_v41 = vpop.permute.xlu0 %678 }
 0x20d   : > { %v683_v39 = vsel %vm682_vm0, %v2585_v33, %v679_v41  ;;  %v689_v61 = vsel %vm682_vm0, %v679_v41, %v2535_v11  ;;  %v673_v25 = vpop.permute.xlu1 %672 }
 0x20e   : > { %v695_v20 = vsel %vm691_vm1, %v689_v61, 0.0  ;;  %v792_v26 = vmul.f32 %v2577_v30, %v683_v39  ;;  %v936_v22 = vmul.f32 %v2588_v62, %v683_v39  ;;  %v1053_v27 = vmul.f32 %v2597_v35, %v683_v39 }
 0x20f   : > { %v789_v28 = vmul.f32 %v2574_v29, %v695_v20  ;;  %v933_v58 = vmul.f32 %v2583_v32, %v695_v20  ;;  %v1050_v33 = vmul.f32 %v2594_v34, %v695_v20  ;;  %v686_v11 = vsel %vm682_vm0, %v673_v25, %v2599_v40 }
 0x210   : > { %v2760_v24 = vadd.f32 %v2580_v31, %v792_v26  ;;  %v2763_v6 = vadd.f32 %v2591_v0, %v936_v22  ;;  %v2766_v18 = vadd.f32 %v2602_v42, %v1053_v27  ;;  %v795_v1 = vmul.f32 %v2547_v16, %v686_v11  ;;  %v708_v10 = vpop.permute.xlu0 %707 }
 0x211   : > { %v828_v19 = vadd.f32 %v2605_v43, %v789_v28  ;;  %v972_v41 = vadd.f32 %v2608_v44, %v933_v58  ;;  %v1089_v39 = vadd.f32 %v2611_v45, %v1050_v33  ;;  %v939_v61 = vmul.f32 %v2553_v21, %v686_v11  ;;  %v681_v20 = vpop.permute.xlu1 %680 }
 0x212   : > { %v2774_v31 = vadd.f32 %v2614_v46, %v795_v1  ;;  %v1056_v0 = vmul.f32 %v2559_v23, %v686_v11  ;;  %v722_v42 = vsel %vm719_vm2, %v708_v10, %v2638_v54  ;;  %v724_v16 = vsel %vm719_vm2, %v2691_v53, %v708_v10 }
 0x213   : > { %v2784_v43 = vadd.f32 %v2617_v47, %v939_v61  ;;  %v859_v44 = vmul.f32 %v2661_v57, %v724_v16  ;;  %v860_v21 = vmul.f32 %v2667_v59, %v722_v42  ;;  %v1003_v45 = vmul.f32 %v2670_v12, %v724_v16 }
 0x214   : > { %v2790_v46 = vadd.f32 %v2620_v48, %v1056_v0  ;;  %v1004_v23 = vmul.f32 %v2673_v36, %v722_v42  ;;  %v1120_v26 = vmul.f32 %v2676_v7, %v724_v16  ;;  %v1121_v22 = vmul.f32 %v2680_v8, %v722_v42  ;;  %v669_v33 = vpop.permute.xlu0 %668 }
 0x215   : > { %v2795_v27 = vadd.f32 %v859_v44, %v828_v19  ;;  %v868_v28 = vadd.f32 %v860_v21, %v829_v49  ;;  %v2797_v47 = vadd.f32 %v1003_v45, %v972_v41  ;;  %v684_v58 = vsel %vm682_vm0, %v2599_v40, %v681_v20  ;;  %v710_v40 = vpop.permute.xlu1 %709  ;;  %v3083_v45 = vld [vmem:[#allocation18_spill] sm:$0xff] }
 0x216   : > { %v2802_v11 = vadd.f32 %v1004_v23, %v973_v3  ;;  %v2804_v48 = vadd.f32 %v1120_v26, %v1089_v39  ;;  %v2806_v1 = vadd.f32 %v1121_v22, %v1090_v15  ;;  %v796_v10 = vmul.f32 %v2577_v30, %v684_v58 }
 0x217   : > { %v875_v19 = vrot.slane %v2795_v27, 7  ;;  %v876_v49 = vrot.slane %v868_v28, 7  ;;  %v940_v41 = vmul.f32 %v2588_v62, %v684_v58  ;;  %v1057_v61 = vmul.f32 %v2597_v35, %v684_v58  ;;  %v3088_v27 = vld [vmem:[#allocation19_spill] sm:$0xff] }
 0x218   : > { %v1136_v3 = vrot.slane %v2804_v48, 1  ;;  %v1137_v39 = vrot.slane %v2806_v1, 1  ;;  %v2817_v15 = vadd.f32 %v2623_v50, %v796_v10  ;;  %v688_v30 = vsel %vm682_vm0, %v669_v33, %v673_v25  ;;  %v3089_v48 = vld [vmem:[#allocation21_spill] sm:$0xff] }
 0x219   : > { %v2822_v0 = vadd.f32 %v2627_v60, %v940_v41  ;;  %v2825_v62 = vadd.f32 %v2630_v52, %v1057_v61  ;;  %v690_v35 = vsel %vm682_vm0, %v681_v20, %v669_v33  ;;  %v794_v42 = vmul.f32 %v2538_v13, %v688_v30  ;;  %v3081_v60 = vld [vmem:[#allocation15_spill] sm:$0xff]  ;;  %v3082_v52 = vld [vmem:[#allocation16_spill] sm:$0xff] }
 0x21a   : > { %v3078_v16 = vand.u32 15, %v2450_v37  ;;  %v699_v50 = vsel %vm691_vm1, %v690_v35, 0.0  ;;  %v938_v25 = vmul.f32 %v3081_v60, %v688_v30  ;;  %v1055_v21 = vmul.f32 %v3082_v52, %v688_v30  ;;  %v3087_v13 = vld [vmem:[#allocation23_spill] sm:$0xff]  ;;  %v3090_v41 = vld [vmem:[#allocation24_spill] sm:$0xff]  ;;  %v3091_v60 = vld [vmem:[#allocation17_spill] sm:$0xff] }
 0x21b   : > { %v3084_v23 = vand.u32 15, %v3083_v45  ;;  %v723_v26 = vsel %vm719_vm2, %v710_v40, %v3087_v13  ;;  %v793_v22 = vmul.f32 %v2574_v29, %v699_v50  ;;  %v833_v28 = vadd.f32 %v3088_v27, %v794_v42  ;;  %v3092_v29 = vld [vmem:[#allocation20_spill] sm:$0xff]  ;;  %v3093_v42 = vld [vmem:[#allocation22_spill] sm:$0xff] }
 0x21c   : > { %vm2832_vm5 = vcmp.ge.s32.totalorder %v3078_v16, 1  ;;  %v937_v58 = vmul.f32 %v2583_v32, %v699_v50  ;;  %v1054_v33 = vmul.f32 %v2594_v34, %v699_v50  ;;  %v977_v10 = vadd.f32 %v3089_v48, %v938_v25  ;;  %v716_v16 = vpop.permute.xlu0 %715 }
 0x21d   : > { %vm2843_vm7 = vcmp.lt.s32.totalorder %v3084_v23, 15  ;;  %v1094_v61 = vadd.f32 %v3090_v41, %v1055_v21  ;;  %v725_v30 = vsel %vm719_vm2, %v2698_v63, %v710_v40  ;;  %v864_v35 = vmul.f32 %v2667_v59, %v723_v26 }
 0x21e   : > { %v832_v52 = vadd.f32 %v3091_v60, %v793_v22  ;;  %v976_v45 = vadd.f32 %v3092_v29, %v937_v58  ;;  %v1093_v23 = vadd.f32 %v3093_v42, %v1054_v33  ;;  %v863_v32 = vmul.f32 %v2661_v57, %v725_v30 }
 0x21f   : > { %v872_v34 = vadd.f32 %v864_v35, %v833_v28  ;;  %v1007_v50 = vmul.f32 %v2670_v12, %v725_v30  ;;  %v1008_v25 = vmul.f32 %v2673_v36, %v723_v26  ;;  %v1124_v21 = vmul.f32 %v2676_v7, %v725_v30  ;;  %v3094_v7 = vld [vmem:[#allocation25_spill] sm:$0xff] }
 0x220   : > { %v871_v27 = vadd.f32 %v863_v32, %v832_v52  ;;  %v1125_v40 = vmul.f32 %v2680_v8, %v723_v26  ;;  %v720_v59 = vsel %vm719_vm2, %v2638_v54, %v716_v16  ;;  %v726_v22 = vsel %vm719_vm2, %v716_v16, %v2691_v53 }
 0x221   : > { %v880_v58 = vrot.slane %v872_v34, 7  ;;  %v1015_v57 = vadd.f32 %v1007_v50, %v976_v45  ;;  %v1016_v28 = vadd.f32 %v1008_v25, %v977_v10  ;;  %v1132_v33 = vadd.f32 %v1124_v21, %v1093_v23  ;;  %v718_v23 = vpop.permute.xlu1 %717  ;;  %v3095_v34 = vld [vmem:[#allocation26_spill] sm:$0xff]  ;;  %v3096_v25 = vld [vmem:[#allocation27_spill] sm:$0xff] }
 0x222   : > { %v879_v12 = vrot.slane %v871_v27, 7  ;;  %v1133_v48 = vadd.f32 %v1125_v40, %v1094_v61  ;;  %v735_v36 = vsel %vm731_vm3, %v726_v22, 0.0  ;;  %v861_v41 = vmul.f32 %v3094_v7, %v720_v59  ;;  %v3097_v27 = vld [vmem:[#allocation28_spill] sm:$0xff] }
 0x223   : > { %v885_v8 = vsel %vm883_vm4, %v876_v49, %v880_v58  ;;  %v889_v54 = vsel %vm883_vm4, %v880_v58, %v876_v49  ;;  %v1140_v26 = vrot.slane %v1132_v33, 1  ;;  %v862_v53 = vmul.f32 %v2707_v2, %v735_v36 }
 0x224   : > { %v884_v10 = vsel %vm883_vm4, %v875_v19, %v879_v12  ;;  %v888_v61 = vsel %vm883_vm4, %v879_v12, %v875_v19  ;;  %v1024_v30 = vadd.f32 %v1016_v28, %v885_v8  ;;  %v1141_v35 = vrot.slane %v1133_v48, 1 }
 0x225   : > { %v894_v16 = vsel %vm2832_vm5, %v888_v61, 0.0  ;;  %v1023_v60 = vadd.f32 %v1015_v57, %v884_v10  ;;  %v1145_v52 = vsel %vm1144_vm6, %v1136_v3, %v1140_v26  ;;  %v1149_v49 = vsel %vm1144_vm6, %v1140_v26, %v1136_v3 }
 0x226   : > { %v1019_v29 = vadd.f32 %v2797_v47, %v894_v16  ;;  %v1159_v45 = vsel %vm2843_vm7, %v1149_v49, 0.0  ;;  %v869_v42 = vadd.f32 %v861_v41, %v2734_v51  ;;  %v870_v19 = vadd.f32 %v862_v53, %v2760_v24 }
 0x227   : > { %v1167_v32 = vadd.f32 %v1159_v45, %v1023_v60  ;;  %v1005_v50 = vmul.f32 %v3095_v34, %v720_v59  ;;  %v1006_v21 = vmul.f32 %v3096_v25, %v735_v36  ;;  %v1122_v40 = vmul.f32 %v3097_v27, %v720_v59 }
 0x228   : > { %v1163_v22 = vadd.f32 %v1145_v52, %v1019_v29  ;;  %v877_v58 = vrot.slane %v869_v42, 7  ;;  %v878_v3 = vrot.slane %v870_v19, 7  ;;  %v1123_v47 = vmul.f32 %v2716_v14, %v735_v36  ;;  %v3098_v42 = vld [vmem:[#allocation29_spill] sm:$0xff] }
 0x229   : > { %v1013_v57 = vadd.f32 %v1005_v50, %v2737_v4  ;;  %v1014_v28 = vadd.f32 %v1006_v21, %v2763_v6  ;;  %v1130_v51 = vadd.f32 %v1122_v40, %v2740_v38  ;;  %v721_v24 = vsel %vm719_vm2, %v3087_v13, %v718_v23 }
 0x22a   : > { %v1131_v33 = vadd.f32 %v1123_v47, %v2766_v18  ;;  %v727_v59 = vsel %vm719_vm2, %v718_v23, %v2698_v63  ;;  %v865_v12 = vmul.f32 %v3094_v7, %v721_v24  ;;  %v1009_v48 = vmul.f32 %v3095_v34, %v721_v24 }
 0x22b   : > { %v1138_v36 = vrot.slane %v1130_v51, 1  ;;  %v739_v4 = vsel %vm731_vm3, %v727_v59, 0.0  ;;  %v1126_v38 = vmul.f32 %v3097_v27, %v721_v24  ;;  %v895_v6 = vsel %vm2832_vm5, %v889_v54, 0.0 }
 0x22c   : > { %v1139_v13 = vrot.slane %v1131_v33, 1  ;;  %v866_v18 = vmul.f32 %v2707_v2, %v739_v4  ;;  %v873_v41 = vadd.f32 %v865_v12, %v2774_v31  ;;  %v1010_v55 = vmul.f32 %v3096_v25, %v739_v4 }
 0x22d   : > { %v1017_v63 = vadd.f32 %v1009_v48, %v2784_v43  ;;  %v1127_v7 = vmul.f32 %v2716_v14, %v739_v4  ;;  %v1134_v8 = vadd.f32 %v1126_v38, %v2790_v46  ;;  %v1020_v9 = vadd.f32 %v2802_v11, %v895_v6 }
 0x22e   : > { %v874_v26 = vadd.f32 %v866_v18, %v2817_v15  ;;  %v881_v53 = vrot.slane %v873_v41, 7  ;;  %v1018_v54 = vadd.f32 %v1010_v55, %v2822_v0  ;;  %v1146_v2 = vsel %vm1144_vm6, %v1137_v39, %v1141_v35 }
 0x22f   : > { %v1135_v31 = vadd.f32 %v1127_v7, %v2825_v62  ;;  %v1142_v10 = vrot.slane %v1134_v8, 1  ;;  %v1150_v14 = vsel %vm1144_vm6, %v1141_v35, %v1137_v39  ;;  %v1164_v43 = vadd.f32 %v1146_v2, %v1020_v9 }
 0x230   : > { %v882_v46 = vrot.slane %v874_v26, 7  ;;  %v886_v11 = vsel %vm883_vm4, %v877_v58, %v881_v53  ;;  %v890_v15 = vsel %vm883_vm4, %v881_v53, %v877_v58  ;;  %v1160_v0 = vsel %vm2843_vm7, %v1150_v14, 0.0 }
 0x231   : > { %v896_v62 = vsel %vm2832_vm5, %v890_v15, 0.0  ;;  %v1025_v61 = vadd.f32 %v1017_v63, %v886_v11  ;;  %v1143_v16 = vrot.slane %v1135_v31, 1  ;;  %v1147_v1 = vsel %vm1144_vm6, %v1138_v36, %v1142_v10 }
 0x232   : > { %v887_v39 = vsel %vm883_vm4, %v878_v3, %v882_v46  ;;  %v891_v35 = vsel %vm883_vm4, %v882_v46, %v878_v3  ;;  %v1021_v60 = vadd.f32 %v1013_v57, %v896_v62  ;;  %v1151_v52 = vsel %vm1144_vm6, %v1142_v10, %v1138_v36 }
 0x233   : > { %v1026_v49 = vadd.f32 %v1018_v54, %v887_v39  ;;  %v1161_v29 = vsel %vm2843_vm7, %v1151_v52, 0.0  ;;  %v1168_v45 = vadd.f32 %v1160_v0, %v1024_v30  ;;  %v1194_v19 = vadd.f32 %v3098_v42, %v1164_v43  ;;  %v1733_v54 = vld [vmem:[%s3033_s6] ss:$0 sm:$0xff]  ;;  %v1988_v39 = vld [vmem:[%s2433_s12 + $0x8] sm:$0xff] }
 0x234   : > { %v1165_v23 = vadd.f32 %v1147_v1, %v1021_v60  ;;  %v1169_v34 = vadd.f32 %v1161_v29, %v1025_v61  ;;  %v1193_v50 = vadd.f32 %v2722_v56, %v1163_v22  ;;  %v1197_v25 = vadd.f32 %v2722_v56, %v1167_v32  ;;  %v1987_v61 = vld [vmem:[%s2433_s12] sm:$0xff] }
 0x235   : > { %v1198_v21 = vadd.f32 %v3098_v42, %v1168_v45  ;;  %v1202_v27 = vmax.f32 %v1194_v19, 0.0  ;;  %v897_v40 = vsel %vm2832_vm5, %v891_v35, 0.0  ;;  %v1148_v58 = vsel %vm1144_vm6, %v1139_v13, %v1143_v16 }
 0x236   : > { %v1201_v3 = vmax.f32 %v1193_v50, 0.0  ;;  %v1205_v47 = vmax.f32 %v1197_v25, 0.0  ;;  %v1022_v30 = vadd.f32 %v1014_v28, %v897_v40  ;;  %v1152_v57 = vsel %vm1144_vm6, %v1143_v16, %v1139_v13 }
 0x237   : > { %v1206_v51 = vmax.f32 %v1198_v21, 0.0  ;;  %v1210_v24 = vmin.f32 %v1202_v27, 6.0  ;;  %v1162_v56 = vsel %vm2843_vm7, %v1152_v57, 0.0  ;;  %v1195_v32 = vadd.f32 %v2728_v17, %v1165_v23 }
 0x238   : > { %v1209_v22 = vmin.f32 %v1201_v3, 6.0  ;;  %v1213_v33 = vmin.f32 %v1205_v47, 6.0  ;;  %v1166_v44 = vadd.f32 %v1148_v58, %v1022_v30  ;;  %v1170_v59 = vadd.f32 %v1162_v56, %v1026_v49 }
 0x239   : > { %v1214_v12 = vmin.f32 %v1206_v51, 6.0  ;;  %v1199_v48 = vadd.f32 %v2728_v17, %v1169_v34  ;;  %v1203_v36 = vmax.f32 %v1195_v32, 0.0 }
 0x23a   : > { %v1217_v4 = vpack.c.bf16 %v1213_v33, %v1209_v22  ;;  %v1196_v28 = vadd.f32 %v2725_v5, %v1166_v44  ;;  %v1200_v37 = vadd.f32 %v2725_v5, %v1170_v59 }
 0x23b   : > { %v1218_v38 = vpack.c.bf16 %v1214_v12, %v1210_v24  ;;  %v1207_v6 = vmax.f32 %v1199_v48, 0.0  ;;  %v1211_v13 = vmin.f32 %v1203_v36, 6.0 }
 0x23c   : > { %v1204_v20 = vmax.f32 %v1196_v28, 0.0  ;;  %v1208_v18 = vmax.f32 %v1200_v37, 0.0 }
 0x23d   : > { %1516 = vmatprep.mubr.bf16.mxu0 %v1218_v38  ;;  %v1215_v41 = vmin.f32 %v1207_v6, 6.0 }
 0x23e   : > { %1517 = vmatmul.mubr.bf16.vlgmr.msra.gmra.mrb[4].mxu0 %v1217_v4  ;;  %v1212_v55 = vmin.f32 %v1204_v20, 6.0  ;;  %v1216_v63 = vmin.f32 %v1208_v18, 6.0 }
 0x23f   : > { %v1219_v7 = vpack.c.bf16 %v1215_v41, %v1211_v13 }
 0x240   : > { %v1220_v8 = vpack.c.bf16 %v1216_v63, %v1212_v55 }
 0x242   : > { %1557 = vmatprep.mubr.bf16.mxu1 %v1220_v8 }
 0x243   : > { %1558 = vmatmul.mubr.bf16.vlgmr.msra.gmra.mrb[4].mxu1 %v1219_v7 }
 0x311   : > { %v1789_v17 = vpop.f32.mrb[4].mxu0 }
 0x312   : > { %v1790_v9 = vpop.f32.mrb[5].mxu0 }
 0x313   : > { %v1791_v26 = vadd.f32 %v1790_v9, %v1789_v17  ;;  %v1792_v5 = vpop.f32.mrb[6].mxu0 }
 0x314   : > { %v1793_v53 = vpop.f32.mrb[7].mxu0 }
 0x315   : > { %v1794_v2 = vadd.f32 %v1793_v53, %v1792_v5  ;;  %v1519_v14 = vadd.f32 %v1791_v26, %v1733_v54 }
 0x316   : > { %v1811_v31 = vpop.f32.mrb[4].mxu1 }
 0x317   : > { %v1812_v10 = vpop.f32.mrb[5].mxu1  ;;  %v1522_v15 = vadd.f32 %v1794_v2, %v1733_v54 }
 0x318   : > { %v1813_v43 = vadd.f32 %v1812_v10, %v1811_v31  ;;  %v1814_v46 = vpop.f32.mrb[6].mxu1 }
 0x319   : > { %v1815_v11 = vpop.f32.mrb[7].mxu1 }
 0x31a   : > { %v1560_v0 = vadd.f32 %v1813_v43, %v1519_v14  ;;  %v1816_v62 = vadd.f32 %v1815_v11, %v1814_v46 }
 0x31c   : > { %v1566_v16 = vadd.f32 %v1987_v61, %v1560_v0  ;;  %v1563_v1 = vadd.f32 %v1816_v62, %v1522_v15 }
 0x31e   : > { %1568 = vst [vmem:[%s340_s15] sm:$0xff] %v1566_v16  ;;  %v1567_v35 = vadd.f32 %v1988_v39, %v1563_v1 }
 0x320   : > { %1569 = vst [vmem:[%s340_s15 + $0x8] sm:$0xff] %v1567_v35 }
 0x321   : > { %2116 = shalt.err (!%p2113_p4)
}
 0x322   : > { %s2117_s12 = scalar_lea.hbm %s2982_s17, 256  ;;  %s2121_s14 = scalar_lea.hbm %s3034_s7, 512 }
 0x323   : > { %p2118_p9 = scmp.ne.s32.totalorder %s2982_s17, %s2117_s12  ;;  %p2122_p8 = scmp.lt.u32.totalorder %s2982_s17, %s3034_s7 }
 0x324   : > { %p2123_p13 = scmp.lt.u32.totalorder %s2121_s14, %s2117_s12  ;;  %p2125_p10 = scmp.lt.u32.totalorder %s2117_s12, %s2982_s17 }
 0x325   : > { %p2119_p0 = pnand %p2118_p9, %p2379_p5 }
 0x326   : > { %p2124_p6 = por %p2123_p13, %p2122_p8 }
 0x327   : > { %p2120_p11 = pneg %p2119_p0 }
 0x328   : > { %p2126_p3 = por %p2125_p10, %p2124_p6 }
 0x32a   : > { %p2127_p7 = pnand %p2126_p3, %p2120_p11 }
 0x32c   : > { %2130 = shalt.err (!%p2127_p7)
}
 0x32d   : > { %s2195_s22 = smov 128   ;;  %s2196_s30 = smov 8  }
 0x32e   : > { %1831 = dma.vmem_to_hbm [thread:$0]  (%p2379_p5), %s2977_s10, 256, %s2982_s17, %s1571_s9, %s2195_s22, %s2195_s22, %s2196_s30  }
 0x32f PF: > { %s1599_s11 = sand.u32 1, %s2165_s24   ;;  %p3099_p12 = scmp.ne.s32.totalorder %s3049_s8, 0 }
 0x330   : > { %p3100_p2 = scmp.ge.s32.totalorder %s2177_s27, 2  ;;  %s1600_s28 = scalar_lea.sflag [#allocation4], %s1599_s11 }
 0x332   : > { %p1848_p1 = pnand %p3100_p2, %p3099_p12 }
 0x334   : > { %2160 = dma.done.wait (!%p1848_p1), %s1600_s28, 256  }
 0x335   : > { %2162 = vsyncadd (!%p1848_p1), %s1600_s28, 4294967040  ;;  %p22_p4 = scmp.ge.s32.totalorder %s2365_s13, 4   ;;  %s3101_s24 = smov %s2169_s25 }
 0x336   : > { %s3102_s25 = smov %s2173_s26  ;;  %s3103_s26 = smov %s2375_s18 }
 0x337   : > { %s3104_s27 = smov %s2365_s13  ;;  %24 = sbr.rel (!%p22_p4) target bundleno = 9 (0x9), region = 113 }
 0x33e   :  { %1605 = vsyncpa [#allocation3], 1 }
 0x33f   :  { %1607 = vsyncpa [#allocation3 + $0x1], 1 }
 0x340   :  { %1608 = vsyncpa [#allocation6], 1 }
 0x341   :  { %1609 = vsyncpa [#allocation9], 1 }
 0x342   :  { %1610 = vsyncpa [#allocation4], 1 }
 0x343   :  { %1612 = vsyncpa [#allocation4 + $0x1], 1 }

</bundles_post_ra>
